<compile_context>
chip_gen: v7x
topology: tpu7x:2x2x1
jax: 0.10.0
libtpu: 0.0.40
codegen_flags: <defaults>
</compile_context>

<pallas_src>
import jax
import jax.numpy as jnp
from jax import lax
from jax.experimental import pallas as pl
from jax.experimental.pallas import tpu as pltpu


MSG_EPS = 1e-7    # GENConv message epsilon
BN_EPS = 1e-5     # BatchNorm1d eps
NEG_BIG = -1e30   # "-inf" init for the running softmax max (avoids inf arith)


def genconv_kernel(x_ref, h_ref, hsrc_ref, ea_ref, dst_ref,
                   w_e_ref, b_e_ref, w1_ref, b1_ref, w2_ref, b2_ref,
                   bn_scale_ref, bn_shift_ref,
                   o_ref,
                   z_scr, num_scr, m_scr):
    i = pl.program_id(0)                  # node tile  ("parallel" -> megacore)
    k = pl.program_id(1)                  # edge tile  ("arbitrary" reduction)
    tn, d = o_ref.shape
    te = ea_ref.shape[0]

    # ---- per node-tile init (first edge tile): reset accumulators ----
    @pl.when(k == 0)
    def _init():
        z_scr[...] = jnp.zeros_like(z_scr)
        num_scr[...] = jnp.zeros_like(num_scr)
        m_scr[...] = jnp.full_like(m_scr, NEG_BIG)

    # ---- edge encoder for this edge tile (tiny: Fe -> D, bf16 MXU, f32 acc) ----
    e = jnp.dot(ea_ref[...], w_e_ref[...],
                preferred_element_type=jnp.float32) + b_e_ref[...]            # [te, D]

    # ---- GEN message.  Padded edges (src padded to node 0, edge_attr padded
    #      to 0) produce a dummy msg that only participates in the running max;
    #      the per-channel shift cancels exactly in num/z, so this is harmless.
    #      Do NOT "fix" by masking. ----
    msg = jnp.maximum(hsrc_ref[...].astype(jnp.float32) + e, 0.0) + MSG_EPS   # [te, D]

    # ---- online (flash-style) per-channel max -> numerically safe softmax ----
    m_prev = m_scr[...]
    m_new = jnp.maximum(m_prev, jnp.max(msg, axis=0, keepdims=True))          # [1, D]
    alpha = jnp.exp(m_prev - m_new)                                           # [1, D]
    z_scr[...] = z_scr[...] * alpha
    num_scr[...] = num_scr[...] * alpha
    m_scr[...] = m_new

    p = jnp.exp(msg - m_new)                                                  # [te, D]

    # ---- dst one-hot for this node tile: compare + cast only (no select);
    #      the tile offset is a scalar op folded into the [te,1] index vector ----
    local = dst_ref[...] - i * tn                                             # [te, 1]
    dst_oh = (local == lax.broadcasted_iota(jnp.int32, (te, tn), 1)
              ).astype(jnp.bfloat16)                                          # [te, tn]

    # ---- scatter-add onto this node tile: two MXU matmuls sharing the LHS ----
    contract = (((0,), (0,)), ((), ()))
    z_scr[...] += lax.dot_general(dst_oh, p.astype(jnp.bfloat16), contract,
                                  preferred_element_type=jnp.float32)         # [tn, D]
    num_scr[...] += lax.dot_general(dst_oh, (p * msg).astype(jnp.bfloat16),
                                    contract,
                                    preferred_element_type=jnp.float32)       # [tn, D]

    # ---- finalize this node tile at the last edge tile ----
    @pl.when(k == pl.num_programs(1) - 1)
    def _finalize():
        aggr = num_scr[...] * pl.reciprocal(jnp.maximum(z_scr[...], 1e-12),
                                            approx=True)                      # softmax aggr (t=1)
        u = (h_ref[...].astype(jnp.float32) + aggr).astype(jnp.bfloat16)      # [tn, D]

        h1 = jnp.maximum(
            jnp.dot(u, w1_ref[...], preferred_element_type=jnp.float32) + b1_ref[...],
            0.0)                                                              # [tn, 2D]
        out = jnp.dot(h1.astype(jnp.bfloat16), w2_ref[...],
                      preferred_element_type=jnp.float32) + b2_ref[...]       # [tn, D]

        out = jnp.maximum(out, 0.0)                        # act=ReLU; Dropout eval = identity
        out = out * bn_scale_ref[...] + bn_shift_ref[...]  # folded eval-mode BatchNorm1d
        o_ref[...] = x_ref[...] + out                      # residual


def _vmem_limit_bytes():
    """Generation-aware VMEM budget (<=48 MiB on v7x's 64 MiB/TC, ~100 MiB on v5e/v6e)."""
    try:
        cap = int(pltpu.get_tpu_info().vmem_capacity_bytes)
    except Exception:
        cap = 64 * 1024 * 1024
    return int(min(max(cap - 16 * 1024 * 1024, 32 * 1024 * 1024), 100 * 1024 * 1024))


def _default_node_tile():
    """M=256 fills the 256x256 MXU on v6e/v7x; v5e's MXUs are 128-wide."""
    try:
        kind = jax.devices()[0].device_kind.lower()
    except Exception:
        kind = ""
    small_mxu = any(t in kind for t in ("v2", "v3", "v4", "v5"))
    return 128 if small_mxu else 256


def gen_conv_layer(x, edge_index, edge_attr, params, *, node_tile=None, edge_tile=512):
    """Hoists projection/gather to XLA, folds BN, pads to tiles, launches kernel."""
    n, d_in = x.shape
    e_num, fe = edge_attr.shape
    d = params["w_in"].shape[1]
    hidden = params["w1"].shape[1]
    assert d_in == d, "residual connection requires dim_in == dim_out"

    if node_tile is None:
        node_tile = _default_node_tile()
    # Keep >= 2 node tiles when the graph allows it so the "parallel" node axis
    # actually splits across v7x's two TensorCores.
    while node_tile > 64 and pl.cdiv(n, node_tile) < 2:
        node_tile //= 2
    # Large edge tiles amortize grid-step overhead / re-streamed edge DMA; only
    # shrink them for tiny graphs to reduce padding waste.
    while edge_tile > 128 and pl.cdiv(e_num, edge_tile) < 2:
        edge_tile //= 2

    n_pad = pl.cdiv(n, node_tile) * node_tile
    e_pad = pl.cdiv(e_num, edge_tile) * edge_tile

    x_p = jnp.pad(x.astype(jnp.float32), ((0, n_pad - n), (0, 0)))
    ea_p = jnp.pad(edge_attr.astype(jnp.float32), ((0, e_pad - e_num), (0, 0)))
    src_p = jnp.pad(edge_index[0].astype(jnp.int32), (0, e_pad - e_num))   # pad -> node 0 (harmless)
    # Padded edges point at a node id that matches no node tile -> contribute nothing.
    dst_p = jnp.pad(edge_index[1].astype(jnp.int32), (0, e_pad - e_num),
                    constant_values=n_pad).reshape(e_pad, 1)

    # Hoisted node projection (plain XLA matmul) + direct h[src] row gather.
    # This removes the per-node-tile re-projection and the O(E*N*D*N/tile)
    # one-hot gather of the previous kernel; the kernel now only streams
    # O(E*D) per-edge data.
    h = x_p @ params["w_in"] + params["b_in"]                 # [n_pad, D] f32
    h_bf = h.astype(jnp.bfloat16)                             # per-node-tile input
    hsrc = jnp.take(h, src_p, axis=0).astype(jnp.bfloat16)    # [e_pad, D]
    ea_bf = ea_p.astype(jnp.bfloat16)

    # Fold eval-mode BatchNorm into one per-channel scale/shift.
    gamma, beta, rmean, rvar = params["bn"]
    bn_scale = (gamma * lax.rsqrt(rvar + BN_EPS)).reshape(1, d)
    bn_shift = (beta - rmean * bn_scale[0]).reshape(1, d)

    bf = lambda w: w.astype(jnp.bfloat16)   # bf16 weights, f32 accumulation on MXU

    n_tiles = n_pad // node_tile
    grid = (n_tiles, e_pad // edge_tile)

    flops = (2.0 * e_pad * fe * d * n_tiles       # edge encoder (re-run per node tile)
             + 4.0 * e_pad * n_pad * d            # two scatter matmuls (z and num)
             + 4.0 * n_pad * d * hidden)          # output MLP
    bytes_accessed = (4 * n_pad * d               # x (residual)
                      + 2 * n_pad * d             # h bf16
                      + n_tiles * (2 * e_pad * d + 2 * e_pad * fe + 4 * e_pad)  # re-streamed edge tiles
                      + 2 * (fe * d + 2 * d * hidden)                           # bf16 weights
                      + 4 * n_pad * d)            # output
    cost = pl.CostEstimate(flops=int(flops),
                           transcendentals=int(e_pad * d * n_tiles),
                           bytes_accessed=int(bytes_accessed))

    # Grid-invariant operands (weights / biases / BN) use constant index maps so
    # they are fetched once; at these dims their double-buffered VMEM cost is
    # < 0.5 MiB, so we keep the default buffering for maximum portability.
    const = lambda r, c: pl.BlockSpec((r, c), lambda i, k: (0, 0))

    out = pl.pallas_call(
        genconv_kernel,
        out_shape=jax.ShapeDtypeStruct((n_pad, d), jnp.float32),
        grid_spec=pltpu.PrefetchScalarGridSpec(
            num_scalar_prefetch=0,
            grid=grid,
            in_specs=[
                pl.BlockSpec((node_tile, d), lambda i, k: (i, 0)),   # x tile (residual, f32)
                pl.BlockSpec((node_tile, d), lambda i, k: (i, 0)),   # h tile (bf16)
                pl.BlockSpec((edge_tile, d), lambda i, k: (k, 0)),   # h[src] tile (bf16)
                pl.BlockSpec((edge_tile, fe), lambda i, k: (k, 0)),  # edge_attr tile (bf16)
                pl.BlockSpec((edge_tile, 1), lambda i, k: (k, 0)),   # dst indices tile
                const(fe, d), const(1, d),                           # w_e, b_e
                const(d, hidden), const(1, hidden),                  # w1, b1
                const(hidden, d), const(1, d),                       # w2, b2
                const(1, d), const(1, d),                            # bn scale / shift
            ],
            out_specs=pl.BlockSpec((node_tile, d), lambda i, k: (i, 0)),
            scratch_shapes=[
                pltpu.VMEM((node_tile, d), jnp.float32),   # z   (softmax denominator)
                pltpu.VMEM((node_tile, d), jnp.float32),   # num (softmax numerator)
                pltpu.VMEM((1, d), jnp.float32),           # running per-channel max
            ]),
        compiler_params=pltpu.CompilerParams(
            dimension_semantics=("parallel", "arbitrary"),
            vmem_limit_bytes=_vmem_limit_bytes()),
        cost_estimate=cost,
    )(x_p, h_bf, hsrc, ea_bf, dst_p,
      bf(params["w_e"]), params["b_e"],
      bf(params["w1"]), params["b1"],
      bf(params["w2"]), params["b2"],
      bn_scale, bn_shift)

    return out[:n]


def init_params(key, dim_in, dim_out, edge_dim):
    hidden = 2 * dim_out
    keys = jax.random.split(key, 8)
    s = 0.05
    return {
        "w_in": s * jax.random.normal(keys[0], (dim_in, dim_out), jnp.float32),
        "b_in": jnp.zeros((1, dim_out), jnp.float32),
        "w_e": s * jax.random.normal(keys[1], (edge_dim, dim_out), jnp.float32),
        "b_e": jnp.zeros((1, dim_out), jnp.float32),
        "w1": s * jax.random.normal(keys[2], (dim_out, hidden), jnp.float32),
        "b1": jnp.zeros((1, hidden), jnp.float32),
        "w2": s * jax.random.normal(keys[3], (hidden, dim_out), jnp.float32),
        "b2": jnp.zeros((1, dim_out), jnp.float32),
        # BatchNorm1d eval state, rows = [gamma, beta, running_mean, running_var]
        "bn": jnp.stack([
            1.0 + 0.1 * jax.random.normal(keys[4], (dim_out,), jnp.float32),
            0.1 * jax.random.normal(keys[5], (dim_out,), jnp.float32),
            0.1 * jax.random.normal(keys[6], (dim_out,), jnp.float32),
            1.0 + 0.1 * jnp.abs(jax.random.normal(keys[7], (dim_out,), jnp.float32)),
        ], axis=0),
    }


def reference_forward(x, edge_index, edge_attr, params):
    """Pure-JAX (f32) reference of the same eval-mode forward."""
    src, dst = edge_index[0], edge_index[1]
    n = x.shape[0]
    h = x @ params["w_in"] + params["b_in"]
    e = edge_attr @ params["w_e"] + params["b_e"]
    msg = jnp.maximum(h[src] + e, 0.0) + MSG_EPS
    mx = jnp.max(msg, axis=0, keepdims=True)
    p = jnp.exp(msg - mx)
    dst_oh = jax.nn.one_hot(dst, n, dtype=jnp.float32)          # [E, N]
    z = dst_oh.T @ p
    num = dst_oh.T @ (p * msg)
    aggr = num / jnp.maximum(z, 1e-12)
    u = h + aggr
    out = jnp.maximum(u @ params["w1"] + params["b1"], 0.0) @ params["w2"] + params["b2"]
    out = jnp.maximum(out, 0.0)
    gamma, beta, rmean, rvar = params["bn"]
    out = (out - rmean) / jnp.sqrt(rvar + BN_EPS) * gamma + beta
    return x + out


if __name__ == "__main__":
    key = jax.random.PRNGKey(0)
    k_x, k_ea, k_src, k_dst, k_par = jax.random.split(key, 5)

    N = 96          # nodes (not a tile multiple -> exercises padding)
    E = 224         # edges (not a tile multiple -> exercises padding)
    DIM = 128       # dim_in == dim_out, lane-dense feature width
    EDGE_DIM = 16   # cfg.gnn.gens.edge_dim

    x = jax.random.normal(k_x, (N, DIM), jnp.float32)
    edge_attr = jax.random.normal(k_ea, (E, EDGE_DIM), jnp.float32)
    src = jax.random.randint(k_src, (E,), 0, N, jnp.int32)
    dst = jax.random.randint(k_dst, (E,), 0, N, jnp.int32)
    edge_index = jnp.stack([src, dst], axis=0)       # [2, E]

    params = init_params(k_par, DIM, DIM, EDGE_DIM)

    out = jax.block_until_ready(gen_conv_layer(x, edge_index, edge_attr, params))

    ref = reference_forward(x, edge_index, edge_attr, params)
    err = float(jnp.max(jnp.abs(out - ref)))

    assert out.shape == (N, DIM)
    assert bool(jnp.all(jnp.isfinite(out)))
    assert err < 0.25, f"max abs error vs f32 reference too large: {err}"
    print("KERNEL_OK")
</pallas_src>

<mosaic_0001>
module attributes {stable_mosaic.version = 11 : i64} {
  func.func @genconv_kernel(%arg0: i32, %arg1: i32, %arg2: memref<64x128xf32, #tpu.memory_space<vmem>>, %arg3: memref<64x128xbf16, #tpu.memory_space<vmem>>, %arg4: memref<128x128xbf16, #tpu.memory_space<vmem>>, %arg5: memref<128x16xbf16, #tpu.memory_space<vmem>>, %arg6: memref<128x1xi32, #tpu.memory_space<vmem>>, %arg7: memref<16x128xbf16, #tpu.memory_space<vmem>>, %arg8: memref<1x128xf32, #tpu.memory_space<vmem>>, %arg9: memref<128x256xbf16, #tpu.memory_space<vmem>>, %arg10: memref<1x256xf32, #tpu.memory_space<vmem>>, %arg11: memref<256x128xbf16, #tpu.memory_space<vmem>>, %arg12: memref<1x128xf32, #tpu.memory_space<vmem>>, %arg13: memref<1x128xf32, #tpu.memory_space<vmem>>, %arg14: memref<1x128xf32, #tpu.memory_space<vmem>>, %arg15: memref<64x128xf32, #tpu.memory_space<vmem>>, %arg16: memref<64x128xf32, #tpu.memory_space<vmem>>, %arg17: memref<64x128xf32, #tpu.memory_space<vmem>>, %arg18: memref<1x128xf32, #tpu.memory_space<vmem>>) attributes {dimension_semantics = [#tpu.dimension_semantics<parallel>, #tpu.dimension_semantics<arbitrary>], iteration_bounds = array<i64: 2, 2>, scalar_prefetch = 0 : i64, scratch_operands = 3 : i64, tpu.core_type = #tpu.core_type<tc>, window_params = [{transform_indices = @transform_0, window_bounds = array<i64: 64, 128>}, {transform_indices = @transform_1, window_bounds = array<i64: 64, 128>}, {transform_indices = @transform_2, window_bounds = array<i64: 128, 128>}, {transform_indices = @transform_3, window_bounds = array<i64: 128, 16>}, {transform_indices = @transform_4, window_bounds = array<i64: 128, 1>}, {pipeline_mode = #tpu.pipeline_mode<synchronous>, transform_indices = @transform_5, window_bounds = array<i64: 16, 128>}, {pipeline_mode = #tpu.pipeline_mode<synchronous>, transform_indices = @transform_6, window_bounds = array<i64: 1, 128>}, {pipeline_mode = #tpu.pipeline_mode<synchronous>, transform_indices = @transform_7, window_bounds = array<i64: 128, 256>}, {pipeline_mode = #tpu.pipeline_mode<synchronous>, transform_indices = @transform_8, window_bounds = array<i64: 1, 256>}, {pipeline_mode = #tpu.pipeline_mode<synchronous>, transform_indices = @transform_9, window_bounds = array<i64: 256, 128>}, {pipeline_mode = #tpu.pipeline_mode<synchronous>, transform_indices = @transform_10, window_bounds = array<i64: 1, 128>}, {pipeline_mode = #tpu.pipeline_mode<synchronous>, transform_indices = @transform_11, window_bounds = array<i64: 1, 128>}, {pipeline_mode = #tpu.pipeline_mode<synchronous>, transform_indices = @transform_12, window_bounds = array<i64: 1, 128>}, {transform_indices = @transform_13, window_bounds = array<i64: 64, 128>}]} {
    %c0_i32 = arith.constant 0 : i32
    %0 = arith.cmpi eq, %arg1, %c0_i32 : i32
    %1 = arith.extui %0 : i1 to i32
    %c0_i32_0 = arith.constant 0 : i32
    %2 = arith.cmpi ne, %1, %c0_i32_0 : i32
    scf.if %2 {
      %cst_36 = arith.constant 0.000000e+00 : f32
      %58 = vector.broadcast %cst_36 : f32 to vector<64x128xf32>
      %c0_37 = arith.constant 0 : index
      %c0_38 = arith.constant 0 : index
      %59 = vector.load %arg16[%c0_37, %c0_38] : memref<64x128xf32, #tpu.memory_space<vmem>>, vector<64x128xf32>
      tpu.vector_store %arg16[%c0_37, %c0_38], %58 {strides = array<i32>} : memref<64x128xf32, #tpu.memory_space<vmem>>, vector<64x128xf32>,
      %cst_39 = arith.constant 0.000000e+00 : f32
      %60 = vector.broadcast %cst_39 : f32 to vector<64x128xf32>
      %c0_40 = arith.constant 0 : index
      %c0_41 = arith.constant 0 : index
      %61 = vector.load %arg17[%c0_40, %c0_41] : memref<64x128xf32, #tpu.memory_space<vmem>>, vector<64x128xf32>
      tpu.vector_store %arg17[%c0_40, %c0_41], %60 {strides = array<i32>} : memref<64x128xf32, #tpu.memory_space<vmem>>, vector<64x128xf32>,
      %cst_42 = arith.constant -1.000000e+30 : f32
      %62 = vector.broadcast %cst_42 : f32 to vector<1x128xf32>
      %c0_43 = arith.constant 0 : index
      %c0_44 = arith.constant 0 : index
      %63 = vector.load %arg18[%c0_43, %c0_44] : memref<1x128xf32, #tpu.memory_space<vmem>>, vector<1x128xf32>
      tpu.vector_store %arg18[%c0_43, %c0_44], %62 {strides = array<i32>} : memref<1x128xf32, #tpu.memory_space<vmem>>, vector<1x128xf32>,
    } else {
    }
    %c0 = arith.constant 0 : index
    %c0_1 = arith.constant 0 : index
    %3 = vector.load %arg5[%c0, %c0_1] : memref<128x16xbf16, #tpu.memory_space<vmem>>, vector<128x16xbf16>
    %c0_2 = arith.constant 0 : index
    %c0_3 = arith.constant 0 : index
    %4 = vector.load %arg7[%c0_2, %c0_3] : memref<16x128xbf16, #tpu.memory_space<vmem>>, vector<16x128xbf16>
    %cst = arith.constant dense<0.000000e+00> : vector<128x128xf32>
    %5 = tpu.matmul %3, %4, %cst {dimension_numbers = #tpu.dot_dimension_numbers<[1], [0], [0], [1], [0, 0, 1, 1], [], []>} : vector<128x16xbf16>, vector<16x128xbf16>, vector<128x128xf32> -> vector<128x128xf32>
    %c0_4 = arith.constant 0 : index
    %c0_5 = arith.constant 0 : index
    %6 = vector.load %arg8[%c0_4, %c0_5] : memref<1x128xf32, #tpu.memory_space<vmem>>, vector<1x128xf32>
    %7 = vector.broadcast %6 : vector<1x128xf32> to vector<128x128xf32>
    %8 = arith.addf %5, %7 : vector<128x128xf32>
    %c0_6 = arith.constant 0 : index
    %c0_7 = arith.constant 0 : index
    %9 = vector.load %arg4[%c0_6, %c0_7] : memref<128x128xbf16, #tpu.memory_space<vmem>>, vector<128x128xbf16>
    %10 = arith.extf %9 : vector<128x128xbf16> to vector<128x128xf32>
    %11 = arith.addf %10, %8 : vector<128x128xf32>
    %cst_8 = arith.constant 0.000000e+00 : f32
    %12 = vector.broadcast %cst_8 : f32 to vector<128x128xf32>
    %13 = arith.maximumf %11, %12 : vector<128x128xf32>
    %cst_9 = arith.constant 1.000000e-07 : f32
    %14 = vector.broadcast %cst_9 : f32 to vector<128x128xf32>
    %15 = arith.addf %13, %14 : vector<128x128xf32>
    %c0_10 = arith.constant 0 : index
    %c0_11 = arith.constant 0 : index
    %16 = vector.load %arg18[%c0_10, %c0_11] : memref<1x128xf32, #tpu.memory_space<vmem>>, vector<1x128xf32>
    %cst_12 = arith.constant dense<0xFF800000> : vector<128xf32>
    %17 = vector.multi_reduction <maximumf>, %15, %cst_12 [0] : vector<128x128xf32> to vector<128xf32>
    %18 = vector.shape_cast %17 : vector<128xf32> to vector<1x128xf32>
    %19 = arith.maximumf %16, %18 : vector<1x128xf32>
    %20 = arith.subf %16, %19 : vector<1x128xf32>
    %21 = math.exp %20 : vector<1x128xf32>
    %c0_13 = arith.constant 0 : index
    %c0_14 = arith.constant 0 : index
    %22 = vector.load %arg16[%c0_13, %c0_14] : memref<64x128xf32, #tpu.memory_space<vmem>>, vector<64x128xf32>
    %23 = vector.broadcast %21 : vector<1x128xf32> to vector<64x128xf32>
    %24 = arith.mulf %22, %23 : vector<64x128xf32>
    %c0_15 = arith.constant 0 : index
    %c0_16 = arith.constant 0 : index
    %25 = vector.load %arg16[%c0_15, %c0_16] : memref<64x128xf32, #tpu.memory_space<vmem>>, vector<64x128xf32>
    tpu.vector_store %arg16[%c0_15, %c0_16], %24 {strides = array<i32>} : memref<64x128xf32, #tpu.memory_space<vmem>>, vector<64x128xf32>,
    %c0_17 = arith.constant 0 : index
    %c0_18 = arith.constant 0 : index
    %26 = vector.load %arg17[%c0_17, %c0_18] : memref<64x128xf32, #tpu.memory_space<vmem>>, vector<64x128xf32>
    %27 = vector.broadcast %21 : vector<1x128xf32> to vector<64x128xf32>
    %28 = arith.mulf %26, %27 : vector<64x128xf32>
    %c0_19 = arith.constant 0 : index
    %c0_20 = arith.constant 0 : index
    %29 = vector.load %arg17[%c0_19, %c0_20] : memref<64x128xf32, #tpu.memory_space<vmem>>, vector<64x128xf32>
    tpu.vector_store %arg17[%c0_19, %c0_20], %28 {strides = array<i32>} : memref<64x128xf32, #tpu.memory_space<vmem>>, vector<64x128xf32>,
    %c0_21 = arith.constant 0 : index
    %c0_22 = arith.constant 0 : index
    %30 = vector.load %arg18[%c0_21, %c0_22] : memref<1x128xf32, #tpu.memory_space<vmem>>, vector<1x128xf32>
    tpu.vector_store %arg18[%c0_21, %c0_22], %19 {strides = array<i32>} : memref<1x128xf32, #tpu.memory_space<vmem>>, vector<1x128xf32>,
    %31 = vector.broadcast %19 : vector<1x128xf32> to vector<128x128xf32>
    %32 = arith.subf %15, %31 : vector<128x128xf32>
    %33 = math.exp %32 : vector<128x128xf32>
    %c0_23 = arith.constant 0 : index
    %c0_24 = arith.constant 0 : index
    %34 = vector.load %arg6[%c0_23, %c0_24] : memref<128x1xi32, #tpu.memory_space<vmem>>, vector<128x1xi32>
    %c64_i32 = arith.constant 64 : i32
    %35 = arith.muli %arg0, %c64_i32 : i32
    %36 = vector.broadcast %35 : i32 to vector<128x1xi32>
    %37 = arith.subi %34, %36 : vector<128x1xi32>
    %38 = tpu.iota {dimensions = array<i32: 1>} : vector<128x64xi32>
    %39 = vector.broadcast %37 : vector<128x1xi32> to vector<128x64xi32>
    %40 = arith.cmpi eq, %39, %38 : vector<128x64xi32>
    %41 = arith.extui %40 : vector<128x64xi1> to vector<128x64xi32>
    %42 = arith.sitofp %41 : vector<128x64xi32> to vector<128x64xf32>
    %43 = arith.truncf %42 : vector<128x64xf32> to vector<128x64xbf16>
    %c0_25 = arith.constant 0 : index
    %c0_26 = arith.constant 0 : index
    %44 = vector.load %arg16[%c0_25, %c0_26] : memref<64x128xf32, #tpu.memory_space<vmem>>, vector<64x128xf32>
    %45 = arith.truncf %33 : vector<128x128xf32> to vector<128x128xbf16>
    %cst_27 = arith.constant dense<0.000000e+00> : vector<64x128xf32>
    %46 = tpu.matmul %43, %45, %cst_27 {dimension_numbers = #tpu.dot_dimension_numbers<[0], [0], [1], [1], [0, 1, 1, 1], [], []>} : vector<128x64xbf16>, vector<128x128xbf16>, vector<64x128xf32> -> vector<64x128xf32>
    %47 = arith.addf %44, %46 : vector<64x128xf32>
    %c0_28 = arith.constant 0 : index
    %c0_29 = arith.constant 0 : index
    %48 = vector.load %arg16[%c0_28, %c0_29] : memref<64x128xf32, #tpu.memory_space<vmem>>, vector<64x128xf32>
    tpu.vector_store %arg16[%c0_28, %c0_29], %47 {strides = array<i32>} : memref<64x128xf32, #tpu.memory_space<vmem>>, vector<64x128xf32>,
    %c0_30 = arith.constant 0 : index
    %c0_31 = arith.constant 0 : index
    %49 = vector.load %arg17[%c0_30, %c0_31] : memref<64x128xf32, #tpu.memory_space<vmem>>, vector<64x128xf32>
    %50 = arith.mulf %33, %15 : vector<128x128xf32>
    %51 = arith.truncf %50 : vector<128x128xf32> to vector<128x128xbf16>
    %cst_32 = arith.constant dense<0.000000e+00> : vector<64x128xf32>
    %52 = tpu.matmul %43, %51, %cst_32 {dimension_numbers = #tpu.dot_dimension_numbers<[0], [0], [1], [1], [0, 1, 1, 1], [], []>} : vector<128x64xbf16>, vector<128x128xbf16>, vector<64x128xf32> -> vector<64x128xf32>
    %53 = arith.addf %49, %52 : vector<64x128xf32>
    %c0_33 = arith.constant 0 : index
    %c0_34 = arith.constant 0 : index
    %54 = vector.load %arg17[%c0_33, %c0_34] : memref<64x128xf32, #tpu.memory_space<vmem>>, vector<64x128xf32>
    tpu.vector_store %arg17[%c0_33, %c0_34], %53 {strides = array<i32>} : memref<64x128xf32, #tpu.memory_space<vmem>>, vector<64x128xf32>,
    %c1_i32 = arith.constant 1 : i32
    %55 = arith.cmpi eq, %arg1, %c1_i32 : i32
    %56 = arith.extui %55 : i1 to i32
    %c0_i32_35 = arith.constant 0 : i32
    %57 = arith.cmpi ne, %56, %c0_i32_35 : i32
    scf.if %57 {
      %c0_36 = arith.constant 0 : index
      %c0_37 = arith.constant 0 : index
      %58 = vector.load %arg17[%c0_36, %c0_37] : memref<64x128xf32, #tpu.memory_space<vmem>>, vector<64x128xf32>
      %c0_38 = arith.constant 0 : index
      %c0_39 = arith.constant 0 : index
      %59 = vector.load %arg16[%c0_38, %c0_39] : memref<64x128xf32, #tpu.memory_space<vmem>>, vector<64x128xf32>
      %cst_40 = arith.constant 9.99999996E-13 : f32
      %60 = vector.broadcast %cst_40 : f32 to vector<64x128xf32>
      %61 = arith.maximumf %59, %60 : vector<64x128xf32>
      %62 = tpu.reciprocal %61 {approx = true} : vector<64x128xf32> -> vector<64x128xf32>
      %63 = arith.mulf %58, %62 : vector<64x128xf32>
      %c0_41 = arith.constant 0 : index
      %c0_42 = arith.constant 0 : index
      %64 = vector.load %arg3[%c0_41, %c0_42] : memref<64x128xbf16, #tpu.memory_space<vmem>>, vector<64x128xbf16>
      %65 = arith.extf %64 : vector<64x128xbf16> to vector<64x128xf32>
      %66 = arith.addf %65, %63 : vector<64x128xf32>
      %67 = arith.truncf %66 : vector<64x128xf32> to vector<64x128xbf16>
      %c0_43 = arith.constant 0 : index
      %c0_44 = arith.constant 0 : index
      %68 = vector.load %arg9[%c0_43, %c0_44] : memref<128x256xbf16, #tpu.memory_space<vmem>>, vector<128x256xbf16>
      %cst_45 = arith.constant dense<0.000000e+00> : vector<64x256xf32>
      %69 = tpu.matmul %67, %68, %cst_45 {dimension_numbers = #tpu.dot_dimension_numbers<[1], [0], [0], [1], [0, 0, 1, 1], [], []>} : vector<64x128xbf16>, vector<128x256xbf16>, vector<64x256xf32> -> vector<64x256xf32>
      %c0_46 = arith.constant 0 : index
      %c0_47 = arith.constant 0 : index
      %70 = vector.load %arg10[%c0_46, %c0_47] : memref<1x256xf32, #tpu.memory_space<vmem>>, vector<1x256xf32>
      %71 = vector.broadcast %70 : vector<1x256xf32> to vector<64x256xf32>
      %72 = arith.addf %69, %71 : vector<64x256xf32>
      %cst_48 = arith.constant 0.000000e+00 : f32
      %73 = vector.broadcast %cst_48 : f32 to vector<64x256xf32>
      %74 = arith.maximumf %72, %73 : vector<64x256xf32>
      %75 = arith.truncf %74 : vector<64x256xf32> to vector<64x256xbf16>
      %c0_49 = arith.constant 0 : index
      %c0_50 = arith.constant 0 : index
      %76 = vector.load %arg11[%c0_49, %c0_50] : memref<256x128xbf16, #tpu.memory_space<vmem>>, vector<256x128xbf16>
      %cst_51 = arith.constant dense<0.000000e+00> : vector<64x128xf32>
      %77 = tpu.matmul %75, %76, %cst_51 {dimension_numbers = #tpu.dot_dimension_numbers<[1], [0], [0], [1], [0, 0, 1, 1], [], []>} : vector<64x256xbf16>, vector<256x128xbf16>, vector<64x128xf32> -> vector<64x128xf32>
      %c0_52 = arith.constant 0 : index
      %c0_53 = arith.constant 0 : index
      %78 = vector.load %arg12[%c0_52, %c0_53] : memref<1x128xf32, #tpu.memory_space<vmem>>, vector<1x128xf32>
      %79 = vector.broadcast %78 : vector<1x128xf32> to vector<64x128xf32>
      %80 = arith.addf %77, %79 : vector<64x128xf32>
      %cst_54 = arith.constant 0.000000e+00 : f32
      %81 = vector.broadcast %cst_54 : f32 to vector<64x128xf32>
      %82 = arith.maximumf %80, %81 : vector<64x128xf32>
      %c0_55 = arith.constant 0 : index
      %c0_56 = arith.constant 0 : index
      %83 = vector.load %arg13[%c0_55, %c0_56] : memref<1x128xf32, #tpu.memory_space<vmem>>, vector<1x128xf32>
      %84 = vector.broadcast %83 : vector<1x128xf32> to vector<64x128xf32>
      %85 = arith.mulf %82, %84 : vector<64x128xf32>
      %c0_57 = arith.constant 0 : index
      %c0_58 = arith.constant 0 : index
      %86 = vector.load %arg14[%c0_57, %c0_58] : memref<1x128xf32, #tpu.memory_space<vmem>>, vector<1x128xf32>
      %87 = vector.broadcast %86 : vector<1x128xf32> to vector<64x128xf32>
      %88 = arith.addf %85, %87 : vector<64x128xf32>
      %c0_59 = arith.constant 0 : index
      %c0_60 = arith.constant 0 : index
      %89 = vector.load %arg2[%c0_59, %c0_60] : memref<64x128xf32, #tpu.memory_space<vmem>>, vector<64x128xf32>
      %90 = arith.addf %89, %88 : vector<64x128xf32>
      %c0_61 = arith.constant 0 : index
      %c0_62 = arith.constant 0 : index
      %91 = vector.load %arg15[%c0_61, %c0_62] : memref<64x128xf32, #tpu.memory_space<vmem>>, vector<64x128xf32>
      tpu.vector_store %arg15[%c0_61, %c0_62], %90 {strides = array<i32>} : memref<64x128xf32, #tpu.memory_space<vmem>>, vector<64x128xf32>,
    } else {
    }
    return
  }
  func.func @transform_0(%arg0: i32, %arg1: i32) -> (i32, i32) {
    %c0_i32 = arith.constant 0 : i32
    %c0_i32_0 = arith.constant 0 : i32
    return %arg0, %c0_i32 : i32, i32
  }
  func.func @transform_1(%arg0: i32, %arg1: i32) -> (i32, i32) {
    %c0_i32 = arith.constant 0 : i32
    %c0_i32_0 = arith.constant 0 : i32
    return %arg0, %c0_i32 : i32, i32
  }
  func.func @transform_2(%arg0: i32, %arg1: i32) -> (i32, i32) {
    %c0_i32 = arith.constant 0 : i32
    %c0_i32_0 = arith.constant 0 : i32
    return %arg1, %c0_i32 : i32, i32
  }
  func.func @transform_3(%arg0: i32, %arg1: i32) -> (i32, i32) {
    %c0_i32 = arith.constant 0 : i32
    %c0_i32_0 = arith.constant 0 : i32
    return %arg1, %c0_i32 : i32, i32
  }
  func.func @transform_4(%arg0: i32, %arg1: i32) -> (i32, i32) {
    %c0_i32 = arith.constant 0 : i32
    %c0_i32_0 = arith.constant 0 : i32
    return %arg1, %c0_i32 : i32, i32
  }
  func.func @transform_5(%arg0: i32, %arg1: i32) -> (i32, i32) {
    %c0_i32 = arith.constant 0 : i32
    %c0_i32_0 = arith.constant 0 : i32
    %c0_i32_1 = arith.constant 0 : i32
    return %c0_i32, %c0_i32_0 : i32, i32
  }
  func.func @transform_6(%arg0: i32, %arg1: i32) -> (i32, i32) {
    %c0_i32 = arith.constant 0 : i32
    %c0_i32_0 = arith.constant 0 : i32
    %c0_i32_1 = arith.constant 0 : i32
    return %c0_i32, %c0_i32_0 : i32, i32
  }
  func.func @transform_7(%arg0: i32, %arg1: i32) -> (i32, i32) {
    %c0_i32 = arith.constant 0 : i32
    %c0_i32_0 = arith.constant 0 : i32
    %c0_i32_1 = arith.constant 0 : i32
    return %c0_i32, %c0_i32_0 : i32, i32
  }
  func.func @transform_8(%arg0: i32, %arg1: i32) -> (i32, i32) {
    %c0_i32 = arith.constant 0 : i32
    %c0_i32_0 = arith.constant 0 : i32
    %c0_i32_1 = arith.constant 0 : i32
    return %c0_i32, %c0_i32_0 : i32, i32
  }
  func.func @transform_9(%arg0: i32, %arg1: i32) -> (i32, i32) {
    %c0_i32 = arith.constant 0 : i32
    %c0_i32_0 = arith.constant 0 : i32
    %c0_i32_1 = arith.constant 0 : i32
    return %c0_i32, %c0_i32_0 : i32, i32
  }
  func.func @transform_10(%arg0: i32, %arg1: i32) -> (i32, i32) {
    %c0_i32 = arith.constant 0 : i32
    %c0_i32_0 = arith.constant 0 : i32
    %c0_i32_1 = arith.constant 0 : i32
    return %c0_i32, %c0_i32_0 : i32, i32
  }
  func.func @transform_11(%arg0: i32, %arg1: i32) -> (i32, i32) {
    %c0_i32 = arith.constant 0 : i32
    %c0_i32_0 = arith.constant 0 : i32
    %c0_i32_1 = arith.constant 0 : i32
    return %c0_i32, %c0_i32_0 : i32, i32
  }
  func.func @transform_12(%arg0: i32, %arg1: i32) -> (i32, i32) {
    %c0_i32 = arith.constant 0 : i32
    %c0_i32_0 = arith.constant 0 : i32
    %c0_i32_1 = arith.constant 0 : i32
    return %c0_i32, %c0_i32_0 : i32, i32
  }
  func.func @transform_13(%arg0: i32, %arg1: i32) -> (i32, i32) {
    %c0_i32 = arith.constant 0 : i32
    %c0_i32_0 = arith.constant 0 : i32
    return %arg0, %c0_i32 : i32, i32
  }
}

</mosaic_0001>

<bundles_post_ra>
// kernel: tpu_custom_call.1
= control target key start
LH: loop header
LB: loop body
LE: loop exit
PB: predicated region body
PF: predicated region fallthrough
CT: control target
= control target key end

     0   :  { %s3381_s0 = inlined_call_operand.vmem [shape: f32[128,128], index: 0, kind: input, shape index: {}]   ;;  %s3382_s1 = inlined_call_operand.hbm [shape: bf16[128,128], index: 1, kind: input, shape index: {}]   ;;  %s3383_s2 = inlined_call_operand.vmem [shape: bf16[256,128], index: 2, kind: input, shape index: {}]   ;;  %s3384_s3 = inlined_call_operand.vmem [shape: bf16[256,16], index: 3, kind: input, shape index: {}]   ;;  %s3385_s4 = inlined_call_operand.vmem [shape: s32[256,1], index: 4, kind: input, shape index: {}]   ;;  %s3386_s5 = inlined_call_operand.vmem [shape: bf16[16,128], index: 5, kind: input, shape index: {}]   ;;  %s3387_s6 = inlined_call_operand.vmem [shape: f32[1,128], index: 6, kind: input, shape index: {}]   ;;  %s3388_s7 = inlined_call_operand.vmem [shape: bf16[128,256], index: 7, kind: input, shape index: {}]   ;;  %s3389_s8 = inlined_call_operand.vmem [shape: f32[1,256], index: 8, kind: input, shape index: {}]   ;;  %s3390_s9 = inlined_call_operand.hbm [shape: bf16[256,128], index: 9, kind: input, shape index: {}]   ;;  %s3391_s10 = inlined_call_operand.vmem [shape: f32[1,128], index: 10, kind: input, shape index: {}]   ;;  %s3392_s11 = inlined_call_operand.vmem [shape: f32[1,128], index: 11, kind: input, shape index: {}]   ;;  %s3393_s12 = inlined_call_operand.vmem [shape: f32[1,128], index: 12, kind: input, shape index: {}]   ;;  %s3394_s13 = inlined_call_operand.hbm [shape: f32[128,128], index: 13, kind: output, shape index: {}]  }
   0x1   :  { %3409 = sst [smem:[#allocation23_spill]] %s3382_s1 }
   0x2   :  { %3410 = sst [smem:[#allocation24_spill]] %s3390_s9 }
   0x3   :  { %3411 = sst [smem:[#allocation25_spill]] %s3391_s10 }
   0x4   :  { %3412 = sst [smem:[#allocation26_spill]] %s3392_s11 }
   0x5   :  { %3413 = sst [smem:[#allocation27_spill]] %s3393_s12 }
   0x6   :  { %3414 = sst [smem:[#allocation28_spill]] %s3394_s13 }
   0x7   :  { %18 = vsyncpa [#allocation6], 0 }
   0x8   :  { %20 = vsyncpa [#allocation6 + $0x1], 0 }
   0x9   :  { %21 = vsyncpa [#allocation9], 0 }
   0xa   :  { %22 = vsyncpa [#allocation7], 0 }
   0xb   :  { %24 = vsyncpa [#allocation7 + $0x1], 0  ;;  %s2806_s25 = smov 0   ;;  %s2808_s26 = smov 0  }
   0xc   :  { %s2810_s27 = smov 0   ;;  %s2812_s28 = smov 0  }
   0xd   :  { %s2814_s29 = smov 0   ;;  %s2816_s30 = smov 0  }
   0xe   :  { %s2818_s14 = smov 0   ;;  %s2820_s15 = smov 0  }
   0xf LB: > { %3415 = sst [smem:[#allocation14_spill]] %s2694_s25  ;;  %s2067_s16 = sadd.s32 4294967295, %s2722_s15   ;;  %s2722_s15 = sphi %s2820_s15, %s30_s15   ;;  %s2718_s14 = sphi %s2818_s14, %s3454_s14   ;;  %s2714_s30 = sphi %s2816_s30, %s3453_s30   ;;  %s2710_s29 = sphi %s2814_s29, %s3452_s29   ;;  %s2706_s28 = sphi %s2812_s28, %s3451_s28   ;;  %s2702_s27 = sphi %s2810_s27, %s3450_s27   ;;  %s2698_s26 = sphi %s2808_s26, %s3449_s26   ;;  %s2694_s25 = sphi %s2806_s25, %s3448_s25  }
  0x10   : > { %3416 = sst [smem:[#allocation15_spill]] %s2698_s26  ;;  %s2068_s17 = sadd.s32 4294967294, %s2722_s15  }
  0x11   : > { %3417 = sst [smem:[#allocation16_spill]] %s2702_s27  ;;  %p88_p0 = scmp.ne.s32.totalorder %s2698_s26, %s2694_s25 }
  0x12   : > { %3418 = sst [smem:[#allocation17_spill]] %s2714_s30  ;;  %p2850_p1 = scmp.eq.s32.totalorder %s2067_s16, 0 }
  0x13   : > { %3419 = sst [smem:[#allocation18_spill]] %s2718_s14  ;;  %p2854_p2 = scmp.eq.s32.totalorder %s2067_s16, 3 }
  0x14   : > { %s3420_s18 = scalar_select %p2850_p1, 1, 0 }
  0x15   : > { %s3421_s19 = scalar_select %p2854_p2, 1, 0 }
  0x16   : > { %p364_p3 = scmp.eq.s32.totalorder %s2068_s17, 3  ;;  %p2860_p4 = por %p2850_p1, %p88_p0 }
  0x17   : > { %p2069_p5 = scmp.ge.s32.totalorder %s2722_s15, 1  ;;  %p371_p7 = scmp.lt.s32.totalorder %s2722_s15, 5 }
  0x18   : > { %s3422_s20 = scalar_select %p2860_p4, 1, 0 }
  0x19   : > { %p2865_p6 = por %p364_p3, %p88_p0  ;;  %p2870_p8 = pnand %p2069_p5, %p371_p7 }
  0x1a   : > { %s2724_s23 = smov [#allocation8]   ;;  %s3427_s9 = sld [smem:[#allocation24_spill]] }
  0x1b   : > { %s3423_s21 = scalar_select %p2865_p6, 1, 0 }
  0x1c   : > { %s3425_s22 = scalar_select %p2870_p8, 1, 0 }
  0x1d   : > { %3424 = sst [smem:[#allocation19_spill]] %s3423_s21  ;;  %s395_s24 = sshll.u32 %s2724_s23, 4  ;;  %s396_s24 = int_to_ptr.vmem [resolvable:$true] %s395_s24 }
  0x1e   : > { %p2371_p9 = pneg %p2870_p8 }
  0x20   : > { %p2878_p10 = pnand %p2371_p9, %p2850_p1  ;;  %s2562_s21 = scalar_lea.hbm %s3427_s9, 2048 }
  0x21   : > { %p2563_p11 = scmp.ne.s32.totalorder %s3427_s9, %s2562_s21  ;;  %p2569_p3 = scmp.lt.u32.totalorder %s2562_s21, %s3427_s9 }
  0x22   : > { %p2564_p12 = pneg %p2878_p10 }
  0x24   : > { %p2565_p13 = pnand %p2564_p12, %p2563_p11 }
  0x26   : > { %p2566_p0 = pneg %p2565_p13 }
  0x28   : > { %p2571_p5 = pnand %p2569_p3, %p2566_p0 }
  0x2a   : > { %2574 = shalt.err (!%p2571_p5)
}
  0x2b   : > { %s2575_s10 = scalar_lea.vmem %s396_s24, 2048  ;;  %p2583_p1 = scmp.lt.s32.totalorder %s396_s24, %s396_s24 }
  0x2c   : > { %p2576_p7 = scmp.ne.s32.totalorder %s396_s24, %s2575_s10  ;;  %p2584_p4 = scmp.lt.s32.totalorder %s2575_s10, %s2575_s10 }
  0x2e   : > { %p2578_p9 = pnand %p2576_p7, %p2564_p12  ;;  %p2585_p8 = por %p2584_p4, %p2583_p1 }
  0x30   : > { %p2579_p6 = pneg %p2578_p9 }
  0x32   : > { %p2586_p2 = pnand %p2585_p8, %p2579_p6 }
  0x34   : > { %2589 = shalt.err (!%p2586_p2)
}
  0x35   : > { %s3402_s12 = smov 64   ;;  %s3403_s11 = smov 4  }
  0x36   : > { %2374 = dma.hbm_to_vmem [thread:$0]  (!%p2878_p10), %s3427_s9, 2048, %s396_s24, [#allocation9], %s3402_s12, %s3402_s12, %s3403_s11  }
  0x37   : > { %s39_s25 = sadd.s32 1, %s2714_s30  ;;  %s42_s21 = sadd.s32 1, %s2718_s14 }
  0x38   : > { %p40_p1 = scmp.ge.s32.totalorder %s39_s25, 2  ;;  %s75_s17 = sadd.s32 1, %s2702_s27 }
  0x39   : > { %p82_p2 = scmp.ne.s32.totalorder %s2702_s27, %s2698_s26  ;;  %p83_p4 = scmp.eq.s32.totalorder %s2722_s15, 0 }
  0x3a   : > { %s3456_s25 = smov (%p40_p1, %s39_s25), 0  ;;  %s3458_s21 = smov (!%p40_p1, %s42_s21), %s2718_s14 }
  0x3b   : > { %3428 = sst [smem:[#allocation20_spill]] %s3456_s25  ;;  %p3429_p6 = scmp.ne.s32.totalorder %s3421_s19, 0 }
  0x3c   : > { %p44_p11 = scmp.ge.s32.totalorder %s3458_s21, 2  ;;  %p2384_p10 = scmp.lt.s32.totalorder %s2722_s15, 4 }
  0x3d   : > { %p2912_p8 = por %p3429_p6, %p82_p2  ;;  %p84_p12 = por %p83_p4, %p82_p2 }
  0x3e   : > { %s427_s24 = sand.u32 1, %s2702_s27   ;;  %s3460_s21 = smov (%p44_p11, %s3458_s21), 0 }
  0x3f   : > { %3431 = sst [smem:[#allocation21_spill]] %s3460_s21  ;;  %s2072_s23 = sshll.u32 %s427_s24, 5 }
  0x40   : > { %s72_s10 = ssub.s32 %s2718_s14, %s3460_s21  ;;  %s2164_s13 = sshll.u32 %s2718_s14, 9 }
  0x41   : > { %p73_p13 = scmp.eq.s32.totalorder %s72_s10, 0  ;;  %s3432_s1 = sld [smem:[#allocation23_spill]] }
  0x42   : > { %s431_s9 = scalar_lea.vmem [#allocation5], %s2072_s23  ;;  %p2935_p0 = pnand %p2384_p10, %p84_p12 }
  0x43   : > { %s438_s25 = sshll.u32 %s431_s9, 4  ;;  %s2939_s12 = scalar_lea.sflag [#allocation6], %s427_s24  ;;  %s2931_s25 = int_to_ptr.vmem [resolvable:$true] %s438_s25 }
  0x44   : > { %s2929_s30 = scalar_select %p73_p13, %s2702_s27, %s75_s17  }
  0x45   : > { %p2592_p5 = pneg %p2935_p0 }
  0x46   : > { %3433 = sst [smem:[#allocation22_spill]] %s2929_s30 }
  0x47   : > { %s2926_s19 = scalar_lea.hbm %s3432_s1, %s2164_s13  ;;  %s2595_s23 = scalar_lea.hbm %s3432_s1, 1024 }
  0x48   : > { %s2590_s11 = scalar_lea.hbm %s2926_s19, 512  ;;  %p2596_p1 = scmp.lt.u32.totalorder %s2926_s19, %s3432_s1 }
  0x49   : > { %p2591_p3 = scmp.ne.s32.totalorder %s2926_s19, %s2590_s11  ;;  %p2597_p2 = scmp.lt.u32.totalorder %s2595_s23, %s2590_s11 }
  0x4a   : > { %p2599_p6 = scmp.lt.u32.totalorder %s2590_s11, %s2926_s19 }
  0x4b   : > { %p2593_p7 = pnand %p2592_p5, %p2591_p3  ;;  %p2598_p4 = por %p2597_p2, %p2596_p1 }
  0x4d   : > { %p2594_p9 = pneg %p2593_p7  ;;  %p2600_p11 = por %p2599_p6, %p2598_p4 }
  0x4f   : > { %p2601_p10 = pnand %p2600_p11, %p2594_p9 }
  0x51   : > { %2604 = shalt.err (!%p2601_p10)
}
  0x52   : > { %s2605_s24 = scalar_lea.vmem %s2931_s25, 512  ;;  %s2727_s9 = smov [#allocation5]  }
  0x53   : > { %p2606_p12 = scmp.ne.s32.totalorder %s2931_s25, %s2605_s24  ;;  %s2610_s17 = sshll.u32 %s2727_s9, 4  ;;  %s2611_s17 = int_to_ptr.vmem [resolvable:$false] %s2610_s17 }
  0x54   : > { %s2612_s10 = scalar_lea.vmem %s2611_s17, 1024  ;;  %p2613_p7 = scmp.lt.s32.totalorder %s2931_s25, %s2611_s17 }
  0x55   : > { %p2608_p13 = pnand %p2606_p12, %p2592_p5  ;;  %p2614_p1 = scmp.lt.s32.totalorder %s2612_s10, %s2605_s24 }
  0x57   : > { %p2609_p3 = pneg %p2608_p13  ;;  %p2615_p2 = por %p2614_p1, %p2613_p7 }
  0x59   : > { %p2616_p4 = pnand %p2615_p2, %p2609_p3 }
  0x5b   : > { %2619 = shalt.err (!%p2616_p4)
}
  0x5c   : > { %s3435_s11 = smov 4   ;;  %s3436_s23 = smov 64  }
  0x5d   : > { %2378 = dma.hbm_to_vmem [thread:$0]  (!%p2935_p0), %s2926_s19, 512, %s2931_s25, %s2939_s12, %s3436_s23, %s3436_s23, %s3435_s11  }
  0x5e   : > { %p3437_p5 = scmp.ne.s32.totalorder %s3425_s22, 0 }
  0x5f   : > { %s2973_s13 = sand.u32 (!%p3437_p5), 1, %s2698_s26   ;;  %p3438_p9 = scmp.ne.s32.totalorder (!%p3437_p5), %s3422_s20, 0 }
  0x60   : > { %477 = sbr.rel (%p3437_p5) target bundleno = 1190 (0x4a6), region = 72  ;;  %s2076_s24 = sshll.u32 (!%p3437_p5), %s2973_s13, 5 }
  0x61   : > { %s480_s9 = scalar_lea.sflag (!%p3437_p5), [#allocation6], %s2973_s13  ;;  %s2977_s17 = scalar_lea.vmem (!%p3437_p5), [#allocation5], %s2076_s24 }
  0x67   : > { %2681 = dma.done.wait (%p3438_p9), %s480_s9, 512  }
  0x68   : > { %2683 = vsyncadd (%p3438_p9), %s480_s9, 4294966784  ;;  %p3439_p0 = scmp.ne.s32.totalorder %s3420_s18, 0 }
  0x6a   : > { %2685 = dma.done.wait (%p3439_p0), [#allocation9], 2048  }
  0x6b   : > { %2687 = vsyncadd (%p3439_p0), [#allocation9], 4294965248  ;;  %s2078_s22 = sshll.u32 %s2973_s13, 6  ;;  %s2079_s25 = sshll.u32 %s2710_s29, 3 }
  0x6c   : > { %p551_p6 = scmp.lt.s32.totalorder %s2079_s25, 15  ;;  %s2081_s21 = sshll.u32 %s2706_s28, 4 }
  0x6d   : > { %p558_p11 = scmp.lt.s32.totalorder %s2081_s21, 31  ;;  %p2087_p10 = scmp.ne.s32.totalorder %s2706_s28, 0 }
  0x6e   : > { %s3462_s25 = smov (!%p551_p6, %s2079_s25), 15  ;;  %v2728_v0 = vmov (!%p2087_p10), 0.0   ;;  %v2729_v1 = vmov (!%p2087_p10), -1e+30  }
  0x6f   : > { %s2080_s19 = sshll.u32 %s3462_s25, 3  ;;  %s3464_s21 = smov (!%p558_p11, %s2081_s21), 31  ;;  %581 = vst [vmem:[#allocation2] sm:$0xff] (!%p2087_p10), %v2728_v0  ;;  %582 = vst [vmem:[#allocation2 + $0x8] sm:$0xff] (!%p2087_p10), %v2728_v0 }
  0x70   : > { %s2993_s20 = scalar_lea.vmem %s3381_s0, %s2080_s19  ;;  %s2082_s11 = sshll.u32 %s3464_s21, 2  ;;  %583 = vst [vmem:[#allocation2 + $0x10] sm:$0xff] (!%p2087_p10), %v2728_v0  ;;  %584 = vst [vmem:[#allocation2 + $0x18] sm:$0xff] (!%p2087_p10), %v2728_v0 }
  0x71   : > { %s2086_s23 = sshll.u32 %s3464_s21, 3  ;;  %s2998_s9 = scalar_lea.vmem %s3383_s2, %s2082_s11  ;;  %585 = vst [vmem:[#allocation2 + $0x20] sm:$0xff] (!%p2087_p10), %v2728_v0  ;;  %586 = vst [vmem:[#allocation2 + $0x28] sm:$0xff] (!%p2087_p10), %v2728_v0 }
  0x72   : > { %s3003_s30 = scalar_lea.vmem %s3384_s3, %s2082_s11  ;;  %s3008_s26 = scalar_lea.vmem %s3385_s4, %s2086_s23  ;;  %587 = vst [vmem:[#allocation2 + $0x30] sm:$0xff] (!%p2087_p10), %v2728_v0  ;;  %588 = vst [vmem:[#allocation2 + $0x38] sm:$0xff] (!%p2087_p10), %v2728_v0 }
  0x73   : > { %s3010_s19 = scalar_lea.vmem [#allocation10], %s2078_s22  ;;  %580 = sbr.rel (%p2087_p10) target bundleno = 122 (0x7a), region = 84  ;;  %589 = vst [vmem:[#allocation3] sm:$0xff] (!%p2087_p10), %v2728_v0  ;;  %590 = vst [vmem:[#allocation3 + $0x8] sm:$0xff] (!%p2087_p10), %v2728_v0 }
  0x74   : > { %591 = vst [vmem:[#allocation3 + $0x10] sm:$0xff] (!%p2087_p10), %v2728_v0  ;;  %592 = vst [vmem:[#allocation3 + $0x18] sm:$0xff] (!%p2087_p10), %v2728_v0 }
  0x75   : > { %593 = vst [vmem:[#allocation3 + $0x20] sm:$0xff] (!%p2087_p10), %v2728_v0  ;;  %594 = vst [vmem:[#allocation3 + $0x28] sm:$0xff] (!%p2087_p10), %v2728_v0 }
  0x76   : > { %595 = vst [vmem:[#allocation3 + $0x30] sm:$0xff] (!%p2087_p10), %v2728_v0  ;;  %596 = vst [vmem:[#allocation3 + $0x38] sm:$0xff] (!%p2087_p10), %v2728_v0 }
  0x77   : > { %597 = vst [vmem:[#allocation4] sm:$0x1] (!%p2087_p10), %v2729_v1 }
  0x7a PF: > { %v2463_v2 = vld [vmem:[%s3386_s5] sm:$0xff]   ;;  %vm669_vm0 = vcmask 130048   ;;  %v2465_v4 = vld [vmem:[%s3003_s30 + $0x8] sm:$0xff]   ;;  %v2730_v5 = vmov 0   ;;  %v2466_v6 = vld [vmem:[%s3003_s30 + $0x10] sm:$0xff]   ;;  %s2106_s14 = sshll.u32 %s2710_s29, 6  ;;  %v906_v45 = vlaneseq }
  0x7b   : > { %v2464_v3 = vld [vmem:[%s3003_s30] sm:$0xff]   ;;  %2297 = vmatprep.subr.bf16.mxu0 %v2463_v2  ;;  %2461 = vset.pattern.permute.xlu0 %v2730_v5  ;;  %v1023_v7 = vstv %s2106_s14  ;;  %v1008_v9 = vld [vmem:[%s3008_s26 + $0x10] sm:$0xff]  ;;  %v1007_v10 = vld [vmem:[%s3008_s26 + $0x8] sm:$0xff]  ;;  %v2731_v49 = vmov 0.0   ;;  %p2123_p12 = scmp.ne.s32.totalorder %s2706_s28, 1 }
  0x7c   : > { %2298 = vmatpush3.bf16.msra.mxu0 %v2463_v2  ;;  %2299 = vmatprep.mubr.msk.bf16.mxu0 %vm669_vm0, %v2464_v3  ;;  %v1006_v8 = vld [vmem:[%s3008_s26] sm:$0xff]  ;;  %v2467_v11 = vld [vmem:[%s3003_s30 + $0x18] sm:$0xff]   ;;  %v1026_v13 = vsub.s32 %v1008_v9, %v1023_v7  ;;  %v1025_v16 = vsub.s32 %v1007_v10, %v1023_v7  ;;  %v1011_v18 = vld [vmem:[%s3008_s26 + $0x28] sm:$0xff]  ;;  %v3050_v46 = vand.u32 127, %v906_v45  ;;  %s3440_s10 = sld [smem:[#allocation25_spill]] (!%p2123_p12)  ;;  %s3441_s18 = sld [smem:[#allocation26_spill]] (!%p2123_p12) }
  0x7d   : > { %2462 = vset.pattern.permute.xlu1 %v2730_v5  ;;  %v1024_v12 = vsub.s32 %v1006_v8, %v1023_v7  ;;  %v1009_v14 = vld [vmem:[%s3008_s26 + $0x18] sm:$0xff]  ;;  %v2468_v15 = vld [vmem:[%s3003_s30 + $0x20] sm:$0xff]   ;;  %v1029_v20 = vsub.s32 %v1011_v18, %v1023_v7  ;;  %v1012_v23 = vld [vmem:[%s3008_s26 + $0x30] sm:$0xff] }
  0x7e   : > { %1049 = vperm.xlu1 %2462, %v1026_v13   ;;  %v1027_v17 = vsub.s32 %v1009_v14, %v1023_v7  ;;  %v1010_v19 = vld [vmem:[%s3008_s26 + $0x20] sm:$0xff]  ;;  %v1013_v22 = vld [vmem:[%s3008_s26 + $0x38] sm:$0xff]  ;;  %v2469_v24 = vld [vmem:[%s3003_s30 + $0x28] sm:$0xff]   ;;  %v1030_v27 = vsub.s32 %v1012_v23, %v1023_v7 }
  0x7f   : > { %2300 = vmatmul.mubr.msk.bf16.vlgmr.msra.gmra.mrb[0].mxu0 %vm669_vm0, %v2465_v4  ;;  %1043 = vperm.xlu0 %2461, %v1024_v12   ;;  %v1028_v21 = vsub.s32 %v1010_v19, %v1023_v7  ;;  %v2470_v25 = vld [vmem:[%s3003_s30 + $0x30] sm:$0xff]   ;;  %v1031_v26 = vsub.s32 %v1013_v22, %v1023_v7  ;;  %v1015_v28 = vld [vmem:[%s3008_s26 + $0x48] sm:$0xff]  ;;  %v1014_v29 = vld [vmem:[%s3008_s26 + $0x40] sm:$0xff] }
  0x80   : > { %2303 = vmatprep.mubr.msk.bf16.mxu0 %vm669_vm0, %v2466_v6  ;;  %v1033_v30 = vsub.s32 %v1015_v28, %v1023_v7  ;;  %v1032_v31 = vsub.s32 %v1014_v29, %v1023_v7  ;;  %v1017_v32 = vld [vmem:[%s3008_s26 + $0x58] sm:$0xff]  ;;  %v1016_v33 = vld [vmem:[%s3008_s26 + $0x50] sm:$0xff]  ;;  %v1019_v37 = vld [vmem:[%s3008_s26 + $0x68] sm:$0xff] }
  0x81   : > { %v2471_v34 = vld [vmem:[%s3003_s30 + $0x38] sm:$0xff]   ;;  %v1035_v35 = vsub.s32 %v1017_v32, %v1023_v7  ;;  %v1034_v36 = vsub.s32 %v1016_v33, %v1023_v7  ;;  %v1018_v38 = vld [vmem:[%s3008_s26 + $0x60] sm:$0xff]  ;;  %v1037_v39 = vsub.s32 %v1019_v37, %v1023_v7  ;;  %v1020_v42 = vld [vmem:[%s3008_s26 + $0x70] sm:$0xff] }
  0x82   : > { %1052 = vperm.xlu1 %2462, %v1027_v17   ;;  %v1036_v40 = vsub.s32 %v1018_v38, %v1023_v7  ;;  %v1021_v41 = vld [vmem:[%s3008_s26 + $0x78] sm:$0xff]  ;;  %v1038_v44 = vsub.s32 %v1020_v42, %v1023_v7  ;;  %v2167_v28 = vld [vmem:[%s2998_s9] sm:$0xff]   ;;  %v2215_v38 = vld [vmem:[%s2998_s9 + $0x10] sm:$0xff]  }
  0x83   : > { %1046 = vperm.xlu0 %2461, %v1025_v16   ;;  %v1039_v43 = vsub.s32 %v1021_v41, %v1023_v7 }
  0x86   : > { %1058 = vperm.xlu1 %2462, %v1029_v20  }
  0x87   : > { %2304 = vmatmul.mubr.msk.bf16.gmra.mrb[4].mxu0 %vm669_vm0, %v2467_v11  ;;  %1055 = vperm.xlu0 %2461, %v1028_v21  }
  0x88   : > { %2307 = vmatprep.mubr.msk.bf16.mxu0 %vm669_vm0, %v2468_v15 }
  0x8a   : > { %1064 = vperm.xlu1 %2462, %v1031_v26   ;;  %v2214_v26 = vld [vmem:[%s2998_s9 + $0x8] sm:$0xff]  }
  0x8b   : > { %1061 = vperm.xlu0 %2461, %v1030_v27   ;;  %v2173_v37 = vunpack.c.h.bf16 %v2214_v26 }
  0x8e   : > { %1070 = vperm.xlu1 %2462, %v1033_v30  }
  0x8f   : > { %2308 = vmatmul.mubr.msk.bf16.gmra.mrb[8].mxu0 %vm669_vm0, %v2469_v24  ;;  %1067 = vperm.xlu0 %2461, %v1032_v31   ;;  %v2172_v31 = vunpack.c.l.bf16 %v2214_v26 }
  0x90   : > { %2311 = vmatprep.mubr.msk.bf16.mxu0 %vm669_vm0, %v2470_v25  ;;  %v3071_v25 = vld [vmem:[%s3387_s6] ss:$0 sm:$0xff] }
  0x92   : > { %1076 = vperm.xlu1 %2462, %v1035_v35   ;;  %v2216_v35 = vld [vmem:[%s2998_s9 + $0x18] sm:$0xff]  }
  0x93   : > { %1073 = vperm.xlu0 %2461, %v1034_v36   ;;  %v2180_v42 = vunpack.c.l.bf16 %v2216_v35 }
  0x96   : > { %1082 = vperm.xlu1 %2462, %v1037_v39  }
  0x97   : > { %2312 = vmatmul.mubr.msk.bf16.gmra.mrb[12].mxu0 %vm669_vm0, %v2471_v34  ;;  %1079 = vperm.xlu0 %2461, %v1036_v40   ;;  %v2168_v34 = vunpack.c.l.bf16 %v2167_v28  ;;  %v2169_v40 = vunpack.c.h.bf16 %v2167_v28 }
  0x9a   : > { %1088 = vperm.xlu1 %2462, %v1039_v43  }
  0x9b   : > { %1085 = vperm.xlu0 %2461, %v1038_v44  }
  0xfd   : > { %v1050_v48 = vpop.permute.xlu1 %1049 }
  0xfe   : > { %v1044_v47 = vpop.permute.xlu0 %1043  ;;  %vm1092_vm2 = vcmp.eq.s32.totalorder %v1050_v48, %v3050_v46 }
  0xff   : > { %vm1090_vm1 = vcmp.eq.s32.totalorder %v1044_v47, %v3050_v46  ;;  %v2109_v53 = vsel %vm1092_vm2, 1.0, %v2731_v49 }
 0x100   : > { %v2107_v50 = vsel %vm1090_vm1, 1.0, %v2731_v49 }
 0x101   : > { %v1053_v52 = vpop.permute.xlu1 %1052 }
 0x102   : > { %v1047_v51 = vpop.permute.xlu0 %1046  ;;  %vm1093_vm4 = vcmp.eq.s32.totalorder %v1053_v52, %v3050_v46 }
 0x103   : > { %vm1091_vm3 = vcmp.eq.s32.totalorder %v1047_v51, %v3050_v46  ;;  %v2110_v55 = vsel %vm1093_vm4, 1.0, %v2731_v49 }
 0x104   : > { %v2108_v54 = vsel %vm1091_vm3, 1.0, %v2731_v49  ;;  %v1139_v59 = vpack.c.bf16 %v2110_v55, %v2109_v53  ;;  %v2218_v55 = vld [vmem:[%s2998_s9 + $0x28] sm:$0xff]  }
 0x105   : > { %v1138_v56 = vpack.c.bf16 %v2108_v54, %v2107_v50  ;;  %v1059_v57 = vpop.permute.xlu1 %1058  ;;  %v2181_v50 = vunpack.c.h.bf16 %v2216_v35  ;;  %v2177_v54 = vunpack.c.h.bf16 %v2215_v38  ;;  %v2220_v35 = vld [vmem:[%s2998_s9 + $0x38] sm:$0xff]  }
 0x106   : > { %v1056_v58 = vpop.permute.xlu0 %1055  ;;  %vm1095_vm5 = vcmp.eq.s32.totalorder %v1059_v57, %v3050_v46 }
 0x107   : > { %1162 = vxpose.xlu0.c.b16.start [1/8] (narrow) %v1138_v56, 64  ;;  %vm1094_vm6 = vcmp.eq.s32.totalorder %v1056_v58, %v3050_v46  ;;  %v2112_v60 = vsel %vm1095_vm5, 1.0, %v2731_v49 }
 0x108   : > { %v2111_v61 = vsel %vm1094_vm6, 1.0, %v2731_v49 }
 0x109   : > { %v1065_v62 = vpop.permute.xlu1 %1064  ;;  %v1140_v0 = vpack.c.bf16 %v2112_v60, %v2111_v61  ;;  %v2217_v60 = vld [vmem:[%s2998_s9 + $0x20] sm:$0xff]  }
 0x10a   : > { %v1062_v63 = vpop.permute.xlu0 %1061  ;;  %vm1097_vm7 = vcmp.eq.s32.totalorder %v1065_v62, %v3050_v46 }
 0x10b   : > { %1163 = vxpose.xlu0.c.b16.cont [2/8] (narrow) %v1139_v59, 64  ;;  %vm1096_vm8 = vcmp.eq.s32.totalorder %v1062_v63, %v3050_v46  ;;  %v2114_v1 = vsel %vm1097_vm7, 1.0, %v2731_v49 }
 0x10c   : > { %v2113_v2 = vsel %vm1096_vm8, 1.0, %v2731_v49 }
 0x10d   : > { %v1071_v3 = vpop.permute.xlu1 %1070  ;;  %v1141_v5 = vpack.c.bf16 %v2114_v1, %v2113_v2 }
 0x10e   : > { %v1068_v4 = vpop.permute.xlu0 %1067  ;;  %vm1099_vm9 = vcmp.eq.s32.totalorder %v1071_v3, %v3050_v46  ;;  %v2188_v3 = vunpack.c.l.bf16 %v2218_v55 }
 0x10f   : > { %1164 = vxpose.xlu0.c.b16.cont [3/8] (narrow) %v1140_v0, 64  ;;  %vm1098_vm10 = vcmp.eq.s32.totalorder %v1068_v4, %v3050_v46  ;;  %v2116_v6 = vsel %vm1099_vm9, 1.0, %v2731_v49 }
 0x110   : > { %v2115_v7 = vsel %vm1098_vm10, 1.0, %v2731_v49 }
 0x111   : > { %v1077_v8 = vpop.permute.xlu1 %1076  ;;  %v1142_v10 = vpack.c.bf16 %v2116_v6, %v2115_v7  ;;  %v2184_v7 = vunpack.c.l.bf16 %v2217_v60 }
 0x112   : > { %v1074_v9 = vpop.permute.xlu0 %1073  ;;  %vm1101_vm11 = vcmp.eq.s32.totalorder %v1077_v8, %v3050_v46 }
 0x113   : > { %1165 = vxpose.xlu0.c.b16.cont [4/8] (narrow) %v1141_v5, 64  ;;  %vm1100_vm12 = vcmp.eq.s32.totalorder %v1074_v9, %v3050_v46  ;;  %v2118_v11 = vsel %vm1101_vm11, 1.0, %v2731_v49 }
 0x114   : > { %v2117_v12 = vsel %vm1100_vm12, 1.0, %v2731_v49 }
 0x115   : > { %v1083_v13 = vpop.permute.xlu1 %1082  ;;  %v1143_v15 = vpack.c.bf16 %v2118_v11, %v2117_v12  ;;  %v2189_v11 = vunpack.c.h.bf16 %v2218_v55 }
 0x116   : > { %v1080_v14 = vpop.permute.xlu0 %1079  ;;  %vm1103_vm13 = vcmp.eq.s32.totalorder %v1083_v13, %v3050_v46 }
 0x117   : > { %1166 = vxpose.xlu0.c.b16.cont [5/8] (narrow) %v1142_v10, 64  ;;  %vm1102_vm14 = vcmp.eq.s32.totalorder %v1080_v14, %v3050_v46  ;;  %v2120_v16 = vsel %vm1103_vm13, 1.0, %v2731_v49 }
 0x118   : > { %v2119_v17 = vsel %vm1102_vm14, 1.0, %v2731_v49 }
 0x119   : > { %v1089_v18 = vpop.permute.xlu1 %1088  ;;  %v1144_v20 = vpack.c.bf16 %v2120_v16, %v2119_v17  ;;  %v2185_v16 = vunpack.c.h.bf16 %v2217_v60 }
 0x11a   : > { %v1086_v19 = vpop.permute.xlu0 %1085  ;;  %vm1105_vm15 = vcmp.eq.s32.totalorder %v1089_v18, %v3050_v46 }
 0x11b   : > { %1167 = vxpose.xlu0.c.b16.cont [6/8] (narrow) %v1143_v15, 64  ;;  %vm1104_vm0 = vcmp.eq.s32.totalorder %v1086_v19, %v3050_v46  ;;  %v2122_v21 = vsel %vm1105_vm15, 1.0, %v2731_v49  ;;  %v2176_v46 = vunpack.c.l.bf16 %v2215_v38  ;;  %v2219_v38 = vld [vmem:[%s2998_s9 + $0x30] sm:$0xff]   ;;  %s3442_s9 = sld [smem:[#allocation27_spill]] (!%p2123_p12) }
 0x11c   : > { %v2121_v22 = vsel %vm1104_vm0, 1.0, %v2731_v49 }
 0x11d   : > { %v1145_v23 = vpack.c.bf16 %v2122_v21, %v2121_v22 }
 0x11f   : > { %1168 = vxpose.xlu0.c.b16.cont [7/8] (narrow) %v1144_v20, 64 }
 0x123   : > { %1169 = vxpose.xlu0.c.b16.end [8/8] (narrow) %v1145_v23, 64 }
 0x152   : > { %v2301_v24 = vpop.f32.mrb[0].mxu0 }
 0x153   : > { %v728_v27 = vpop.f32.mrb[1].mxu0  ;;  %v737_v30 = vadd.f32 %v2301_v24, %v3071_v25 }
 0x154   : > { %v2302_v29 = vpop.f32.mrb[2].mxu0  ;;  %v729_v33 = vadd.f32 %v3071_v25, %v728_v27 }
 0x155   : > { %v731_v32 = vpop.f32.mrb[3].mxu0  ;;  %v740_v36 = vadd.f32 %v2302_v29, %v3071_v25  ;;  %v825_v41 = vadd.f32 %v2172_v31, %v737_v30 }
 0x156   : > { %v732_v39 = vadd.f32 %v3071_v25, %v731_v32  ;;  %v823_v43 = vadd.f32 %v2168_v34, %v729_v33 }
 0x157   : > { %v826_v47 = vadd.f32 %v2173_v37, %v740_v36  ;;  %v841_v56 = vmax.f32 %v825_v41, 0.0 }
 0x158   : > { %v824_v51 = vadd.f32 %v2169_v40, %v732_v39  ;;  %v839_v61 = vmax.f32 %v823_v43, 0.0  ;;  %v2196_v43 = vunpack.c.l.bf16 %v2220_v35 }
 0x159   : > { %v842_v0 = vmax.f32 %v826_v47, 0.0  ;;  %v3087_v8 = vadd.f32 1e-07, %v841_v56 }
 0x15a   : > { %v2305_v44 = vpop.f32.mrb[4].mxu0  ;;  %v840_v4 = vmax.f32 %v824_v51, 0.0  ;;  %v3091_v12 = vadd.f32 1e-07, %v839_v61 }
 0x15b   : > { %v753_v48 = vadd.f32 %v2305_v44, %v3071_v25  ;;  %v744_v49 = vpop.f32.mrb[5].mxu0  ;;  %v3095_v17 = vadd.f32 1e-07, %v842_v0 }
 0x15c   : > { %v745_v52 = vadd.f32 %v3071_v25, %v744_v49  ;;  %v2306_v53 = vpop.f32.mrb[6].mxu0  ;;  %v3102_v22 = vadd.f32 1e-07, %v840_v4 }
 0x15d   : > { %v829_v57 = vadd.f32 %v2180_v42, %v753_v48  ;;  %v756_v58 = vadd.f32 %v2306_v53, %v3071_v25  ;;  %v747_v59 = vpop.f32.mrb[7].mxu0  ;;  %v2192_v48 = vunpack.c.l.bf16 %v2219_v38  ;;  %v2197_v53 = vunpack.c.h.bf16 %v2220_v35 }
 0x15e   : > { %v827_v62 = vadd.f32 %v2176_v46, %v745_v52  ;;  %v748_v63 = vadd.f32 %v3071_v25, %v747_v59 }
 0x15f   : > { %v845_v1 = vmax.f32 %v829_v57, 0.0  ;;  %v830_v2 = vadd.f32 %v2181_v50, %v756_v58  ;;  %v2193_v58 = vunpack.c.h.bf16 %v2219_v38 }
 0x160   : > { %v843_v5 = vmax.f32 %v827_v62, 0.0  ;;  %v828_v6 = vadd.f32 %v2177_v54, %v748_v63 }
 0x161   : > { %v3089_v9 = vadd.f32 1e-07, %v845_v1  ;;  %v846_v10 = vmax.f32 %v830_v2, 0.0 }
 0x162   : > { %v3093_v13 = vadd.f32 1e-07, %v843_v5  ;;  %v844_v14 = vmax.f32 %v828_v6, 0.0  ;;  %v2309_v15 = vpop.f32.mrb[8].mxu0 }
 0x163   : > { %v874_v18 = vmax.f32 %v3087_v8, %v3089_v9  ;;  %v3099_v19 = vadd.f32 1e-07, %v846_v10  ;;  %v769_v20 = vadd.f32 %v2309_v15, %v3071_v25  ;;  %v760_v21 = vpop.f32.mrb[9].mxu0 }
 0x164   : > { %v872_v23 = vmax.f32 %v3091_v12, %v3093_v13  ;;  %v3106_v24 = vadd.f32 1e-07, %v844_v14  ;;  %v761_v26 = vadd.f32 %v3071_v25, %v760_v21  ;;  %v2310_v27 = vpop.f32.mrb[10].mxu0 }
 0x165   : > { %v875_v28 = vmax.f32 %v3095_v17, %v3099_v19  ;;  %v833_v29 = vadd.f32 %v2188_v3, %v769_v20  ;;  %v772_v30 = vadd.f32 %v2310_v27, %v3071_v25  ;;  %v763_v31 = vpop.f32.mrb[11].mxu0 }
 0x166   : > { %v873_v32 = vmax.f32 %v3102_v22, %v3106_v24  ;;  %v831_v33 = vadd.f32 %v2184_v7, %v761_v26  ;;  %v764_v34 = vadd.f32 %v3071_v25, %v763_v31 }
 0x167   : > { %v849_v36 = vmax.f32 %v833_v29, 0.0  ;;  %v834_v37 = vadd.f32 %v2189_v11, %v772_v30 }
 0x168   : > { %v847_v39 = vmax.f32 %v831_v33, 0.0  ;;  %v832_v40 = vadd.f32 %v2185_v16, %v764_v34  ;;  %v871_v34 = vld [vmem:[#allocation4] sm:$0x1] }
 0x169   : > { %v3117_v41 = vadd.f32 1e-07, %v849_v36  ;;  %v850_v42 = vmax.f32 %v834_v37, 0.0 }
 0x16a   : > { %v3119_v44 = vadd.f32 1e-07, %v847_v39  ;;  %v848_v46 = vmax.f32 %v832_v40, 0.0  ;;  %v2313_v47 = vpop.f32.mrb[12].mxu0 }
 0x16b   : > { %v878_v49 = vmax.f32 %v874_v18, %v3117_v41  ;;  %v3122_v50 = vadd.f32 1e-07, %v850_v42  ;;  %v785_v51 = vadd.f32 %v2313_v47, %v3071_v25  ;;  %v776_v52 = vpop.f32.mrb[13].mxu0 }
 0x16c   : > { %v876_v54 = vmax.f32 %v872_v23, %v3119_v44  ;;  %v3126_v55 = vadd.f32 1e-07, %v848_v46  ;;  %v777_v56 = vadd.f32 %v3071_v25, %v776_v52  ;;  %v2314_v57 = vpop.f32.mrb[14].mxu0 }
 0x16d   : > { %v879_v59 = vmax.f32 %v875_v28, %v3122_v50  ;;  %v837_v60 = vadd.f32 %v2196_v43, %v785_v51  ;;  %v788_v61 = vadd.f32 %v2314_v57, %v3071_v25  ;;  %v779_v62 = vpop.f32.mrb[15].mxu0  ;;  %v1170_v16 = vpop.trf.xlu0 }
 0x16e   : > { %v877_v63 = vmax.f32 %v873_v32, %v3126_v55  ;;  %v835_v0 = vadd.f32 %v2192_v48, %v777_v56  ;;  %v780_v1 = vadd.f32 %v3071_v25, %v779_v62  ;;  %2331 = vmatprep.mubr.bf16.mxu1 %v1170_v16  ;;  %2355 = vmatprep.mubr.bf16.mxu0 %v1170_v16  ;;  %v3146_v32 = vshrl.u32 %v906_v45, 7 }
 0x16f   : > { %v853_v2 = vmax.f32 %v837_v60, 0.0  ;;  %v838_v3 = vadd.f32 %v2197_v53, %v788_v61 }
 0x170   : > { %v851_v4 = vmax.f32 %v835_v0, 0.0  ;;  %v836_v5 = vadd.f32 %v2193_v58, %v780_v1  ;;  %v3149_v36 = vsub.s32 0, %v3146_v32 }
 0x171   : > { %v3133_v6 = vadd.f32 1e-07, %v853_v2  ;;  %v854_v7 = vmax.f32 %v838_v3, 0.0 }
 0x172   : > { %v3135_v10 = vadd.f32 1e-07, %v851_v4  ;;  %v852_v11 = vmax.f32 %v836_v5, 0.0 }
 0x173   : > { %v882_v14 = vmax.f32 %v878_v49, %v3133_v6  ;;  %v3138_v15 = vadd.f32 1e-07, %v854_v7 }
 0x174   : > { %v880_v18 = vmax.f32 %v876_v54, %v3135_v10  ;;  %v3141_v20 = vadd.f32 1e-07, %v852_v11 }
 0x175   : > { %v883_v25 = vmax.f32 %v879_v59, %v3138_v15 }
 0x176   : > { %v881_v21 = vmax.f32 %v877_v63, %v3141_v20 }
 0x177   : > { %v885_v23 = vmax.f32 %v882_v14, %v883_v25 }
 0x178   : > { %v884_v26 = vmax.f32 %v880_v18, %v881_v21 }
 0x17a   : > { %v886_v27 = vmax.f32 %v884_v26, %v885_v23 }
 0x17c   : > { %v887_v28 = vrot.slane %v886_v27, 4 }
 0x17e   : > { %v888_v29 = vmax.f32 %v886_v27, %v887_v28 }
 0x180   : > { %v889_v30 = vrot.slane %v888_v29, 2 }
 0x182   : > { %v890_v31 = vmax.f32 %v888_v29, %v889_v30 }
 0x184   : > { %v891_v33 = vrot.slane %v890_v31, 1 }
 0x186   : > { %v892_v35 = vmax.f32 %v890_v31, %v891_v33 }
 0x188   : > { %v893_v37 = vmax.f32 %v871_v34, %v892_v35 }
 0x18a   : > { %v894_v38 = vsub.f32 %v871_v34, %v893_v37  ;;  %951 = vst [vmem:[#allocation4] sm:$0x1] %v893_v37  ;;  %v956_v39 = vrot.slane %v893_v37, %v3149_v36 }
 0x18c   : > { %v895_v40 = vmul.f32 1.442695, %v894_v38  ;;  %v971_v42 = vsub.f32 %v3141_v20, %v956_v39  ;;  %v958_v43 = vsub.f32 %v3091_v12, %v956_v39  ;;  %v959_v46 = vsub.f32 %v3102_v22, %v956_v39 }
 0x18d   : > { %v960_v45 = vsub.f32 %v3087_v8, %v956_v39  ;;  %v961_v47 = vsub.f32 %v3095_v17, %v956_v39  ;;  %v962_v48 = vsub.f32 %v3093_v13, %v956_v39  ;;  %v963_v49 = vsub.f32 %v3106_v24, %v956_v39 }
 0x18e   : > { %2472 = vpow2.f32 %v895_v40  ;;  %v1000_v51 = vmul.f32 1.442695, %v971_v42  ;;  %v974_v52 = vmul.f32 1.442695, %v958_v43  ;;  %v976_v53 = vmul.f32 1.442695, %v959_v46 }
 0x18f   : > { %v978_v54 = vmul.f32 1.442695, %v960_v45  ;;  %v964_v56 = vsub.f32 %v3089_v9, %v956_v39  ;;  %v980_v57 = vmul.f32 1.442695, %v961_v47  ;;  %v965_v58 = vsub.f32 %v3099_v19, %v956_v39 }
 0x190   : > { %2474 = vpow2.f32 %v1000_v51  ;;  %v966_v59 = vsub.f32 %v3119_v44, %v956_v39  ;;  %v982_v60 = vmul.f32 1.442695, %v962_v48  ;;  %v967_v61 = vsub.f32 %v3126_v55, %v956_v39 }
 0x191   : > { %2476 = vpow2.f32 %v974_v52  ;;  %v968_v62 = vsub.f32 %v3117_v41, %v956_v39  ;;  %v984_v63 = vmul.f32 1.442695, %v963_v49  ;;  %v969_v0 = vsub.f32 %v3122_v50, %v956_v39 }
 0x192   : > { %2478 = vpow2.f32 %v976_v53  ;;  %v986_v1 = vmul.f32 1.442695, %v964_v56  ;;  %v970_v2 = vsub.f32 %v3135_v10, %v956_v39  ;;  %v988_v3 = vmul.f32 1.442695, %v965_v58 }
 0x193   : > { %2480 = vpow2.f32 %v978_v54  ;;  %v972_v4 = vsub.f32 %v3133_v6, %v956_v39  ;;  %v973_v5 = vsub.f32 %v3138_v15, %v956_v39  ;;  %v990_v7 = vmul.f32 1.442695, %v966_v59 }
 0x194   : > { %2482 = vpow2.f32 %v980_v57  ;;  %v992_v11 = vmul.f32 1.442695, %v967_v61  ;;  %v994_v14 = vmul.f32 1.442695, %v968_v62  ;;  %v996_v18 = vmul.f32 1.442695, %v969_v0 }
 0x195   : > { %2484 = vpow2.f32 %v982_v60  ;;  %v998_v21 = vmul.f32 1.442695, %v970_v2  ;;  %v1002_v26 = vmul.f32 1.442695, %v972_v4  ;;  %v1004_v29 = vmul.f32 1.442695, %v973_v5 }
 0x196   : > { %2486 = vpow2.f32 %v984_v63  ;;  %v897_v5 = vld [vmem:[#allocation2] sm:$0xff] }
 0x197   : > { %2488 = vpow2.f32 %v986_v1 }
 0x198   : > { %v2473_v16 = vpop.eup %2472  ;;  %2490 = vpow2.f32 %v988_v3 }
 0x199   : > { %v3169_v25 = vrot.slane %v2473_v16, %v3149_v36  ;;  %2492 = vpow2.f32 %v990_v7  ;;  %v900_v7 = vld [vmem:[#allocation2 + $0x18] sm:$0xff]  ;;  %v898_v16 = vld [vmem:[#allocation2 + $0x8] sm:$0xff] }
 0x19a   : > { %v2475_v23 = vpop.eup %2474  ;;  %2494 = vpow2.f32 %v992_v11  ;;  %v929_v11 = vld [vmem:[#allocation3 + $0x10] sm:$0xff] }
 0x19b   : > { %v2477_v27 = vpop.eup %2476  ;;  %2496 = vpow2.f32 %v994_v14  ;;  %v1280_v28 = vmul.f32 %v2475_v23, %v3141_v20 }
 0x19c   : > { %v2479_v30 = vpop.eup %2478  ;;  %v1267_v31 = vmul.f32 %v2477_v27, %v3091_v12  ;;  %2498 = vpow2.f32 %v996_v18  ;;  %v927_v18 = vld [vmem:[#allocation3] sm:$0xff] }
 0x19d   : > { %v2481_v33 = vpop.eup %2480  ;;  %v1154_v34 = vpack.c.bf16 %v2479_v30, %v2477_v27  ;;  %v1268_v35 = vmul.f32 %v2479_v30, %v3102_v22  ;;  %2500 = vpow2.f32 %v998_v21  ;;  %v937_v30 = vmul.f32 %v929_v11, %v3169_v25  ;;  %v2506_v11 = vld [vmem:[%s3388_s7 + $0x4] ss:$8 sps:$4 sm:$0xff] (!%p2123_p12)  }
 0x19e   : > { %v2483_v37 = vpop.eup %2482  ;;  %v1269_v38 = vmul.f32 %v2481_v33, %v3087_v8  ;;  %2502 = vpow2.f32 %v1002_v26  ;;  %v930_v26 = vld [vmem:[#allocation3 + $0x18] sm:$0xff] }
 0x19f   : > { %v2485_v39 = vpop.eup %2484  ;;  %2315 = vmatprep.subr.bf16.mxu1 %v1154_v34  ;;  %v1155_v40 = vpack.c.bf16 %v2483_v37, %v2481_v33  ;;  %v1283_v42 = vpack.c.bf16 %v1268_v35, %v1267_v31  ;;  %v1270_v20 = vmul.f32 %v2483_v37, %v3095_v17  ;;  %2504 = vpow2.f32 %v1004_v29  ;;  %v928_v31 = vld [vmem:[#allocation3 + $0x8] sm:$0xff] }
 0x1a0   : > { %v2487_v43 = vpop.eup %2486  ;;  %2316 = vmatpush3.bf16.msra.mxu1 %v1154_v34  ;;  %v1271_v12 = vmul.f32 %v2485_v39, %v3093_v13  ;;  %v914_v29 = vmul.f32 %v3169_v25, %v900_v7  ;;  %v912_v37 = vmul.f32 %v3169_v25, %v898_v16  ;;  %v2509_v16 = vld [vmem:[%s3388_s7 + $0x14] ss:$8 sps:$4 sm:$0xff] (!%p2123_p12)  }
 0x1a1   : > { %v2489_v46 = vpop.eup %2488  ;;  %2317 = vmatprep.subr.bf16.mxu1 %v1155_v40  ;;  %2339 = vmatprep.subr.bf16.mxu0 %v1283_v42  ;;  %v1284_v22 = vpack.c.bf16 %v1270_v20, %v1269_v38  ;;  %v1156_v45 = vpack.c.bf16 %v2487_v43, %v2485_v39  ;;  %v1272_v47 = vmul.f32 %v2487_v43, %v3106_v24 }
 0x1a2   : > { %v2491_v8 = vpop.eup %2490  ;;  %2340 = vmatpush3.bf16.msra.mxu0 %v1283_v42  ;;  %v1273_v48 = vmul.f32 %v2489_v46, %v3089_v9  ;;  %v935_v38 = vmul.f32 %v927_v18, %v3169_v25  ;;  %v938_v43 = vmul.f32 %v930_v26, %v3169_v25  ;;  %v2511_v18 = vld [vmem:[%s3388_s7 + $0x10] ss:$8 sps:$4 sm:$0xff] (!%p2123_p12)   ;;  %v2515_v26 = vld [vmem:[%s3388_s7 + $0x34] ss:$8 sps:$4 sm:$0xff] (!%p2123_p12)  }
 0x1a3   : > { %v2493_v49 = vpop.eup %2492  ;;  %2341 = vmatprep.subr.bf16.mxu0 %v1284_v22  ;;  %v1285_v51 = vpack.c.bf16 %v1272_v47, %v1271_v12  ;;  %v1157_v17 = vpack.c.bf16 %v2491_v8, %v2489_v46  ;;  %v1274_v52 = vmul.f32 %v2491_v8, %v3099_v19  ;;  %v903_v47 = vld [vmem:[#allocation2 + $0x30] sm:$0xff] }
 0x1a4   : > { %v2495_v53 = vpop.eup %2494  ;;  %2318 = vmatpush3.bf16.msra.mxu1 %v1155_v40  ;;  %v1275_v13 = vmul.f32 %v2493_v49, %v3119_v44 }
 0x1a5   : > { %v2497_v54 = vpop.eup %2496  ;;  %2319 = vmatprep.subr.bf16.mxu1 %v1156_v45  ;;  %v1286_v56 = vpack.c.bf16 %v1274_v52, %v1273_v48  ;;  %v1158_v57 = vpack.c.bf16 %v2495_v53, %v2493_v49  ;;  %v1276_v24 = vmul.f32 %v2495_v53, %v3126_v55  ;;  %v901_v49 = vld [vmem:[#allocation2 + $0x20] sm:$0xff]  ;;  %v933_v52 = vld [vmem:[#allocation3 + $0x30] sm:$0xff]  ;;  %v917_v53 = vmul.f32 %v3169_v25, %v903_v47 }
 0x1a6   : > { %v2499_v58 = vpop.eup %2498  ;;  %2342 = vmatpush3.bf16.msra.mxu0 %v1284_v22  ;;  %v1277_v9 = vmul.f32 %v2497_v54, %v3117_v41  ;;  %v2530_v47 = vld [vmem:[#allocation8 + $0x40] sm:$0xff] (!%p2123_p12)  }
 0x1a7   : > { %v2501_v59 = vpop.eup %2500  ;;  %2343 = vmatprep.subr.bf16.mxu0 %v1285_v51  ;;  %v1287_v60 = vpack.c.bf16 %v1276_v24, %v1275_v13  ;;  %v1159_v61 = vpack.c.bf16 %v2499_v58, %v2497_v54  ;;  %v1278_v19 = vmul.f32 %v2499_v58, %v3122_v50  ;;  %v1171_v50 = vpop.trf.xlu0  ;;  %v902_v13 = vld [vmem:[#allocation2 + $0x28] sm:$0xff]  ;;  %v931_v54 = vld [vmem:[#allocation3 + $0x20] sm:$0xff]  ;;  %v934_v24 = vld [vmem:[#allocation3 + $0x38] sm:$0xff] }
 0x1a8   : > { %v2503_v62 = vpop.eup %2502  ;;  %2320 = vmatpush3.bf16.msra.mxu1 %v1156_v45  ;;  %v1160_v63 = vpack.c.bf16 %v2475_v23, %v2501_v59  ;;  %v1279_v44 = vmul.f32 %v2501_v59, %v3135_v10  ;;  %v911_v23 = vmul.f32 %v3169_v25, %v897_v5  ;;  %v936_v45 = vmul.f32 %v928_v31, %v3169_v25 }
 0x1a9   : > { %v2505_v0 = vpop.eup %2504  ;;  %2321 = vmatprep.subr.bf16.mxu1 %v1157_v17  ;;  %v1288_v1 = vpack.c.bf16 %v1278_v19, %v1277_v9  ;;  %v1281_v55 = vmul.f32 %v2503_v62, %v3133_v6 }
 0x1aa   : > { %2344 = vmatpush3.bf16.msra.mxu0 %v1285_v51  ;;  %v1289_v2 = vpack.c.bf16 %v1280_v28, %v1279_v44  ;;  %v1161_v3 = vpack.c.bf16 %v2505_v0, %v2503_v62  ;;  %v1282_v41 = vmul.f32 %v2505_v0, %v3138_v15  ;;  %v899_v15 = vld [vmem:[#allocation2 + $0x10] sm:$0xff]  ;;  %v916_v44 = vmul.f32 %v3169_v25, %v902_v13 }
 0x1ab   : > { %2345 = vmatprep.subr.bf16.mxu0 %v1286_v56  ;;  %v1172_v6 = vpop.trf.xlu0  ;;  %v913_v14 = vmul.f32 %v3169_v25, %v899_v15  ;;  %v939_v0 = vmul.f32 %v931_v54, %v3169_v25  ;;  %v2534_v54 = vld [vmem:[#allocation8 + $0x50] sm:$0xff] (!%p2123_p12)  }
 0x1ac   : > { %2322 = vmatpush3.bf16.msra.mxu1 %v1157_v17  ;;  %v1290_v4 = vpack.c.bf16 %v1282_v41, %v1281_v55  ;;  %v904_v17 = vld [vmem:[#allocation2 + $0x38] sm:$0xff]  ;;  %v942_v41 = vmul.f32 %v934_v24, %v3169_v25  ;;  %v2221_v24 = vld [vmem:[%s2977_s17 + $0x8] sm:$0xff] (!%p2123_p12)  }
 0x1ad   : > { %2323 = vmatprep.subr.bf16.mxu1 %v1158_v57  ;;  %v918_v59 = vmul.f32 %v3169_v25, %v904_v17  ;;  %v2532_v17 = vld [vmem:[#allocation8 + $0x48] sm:$0xff] (!%p2123_p12)  }
 0x1ae   : > { %2346 = vmatpush3.bf16.msra.mxu0 %v1286_v56 }
 0x1af   : > { %2347 = vmatprep.subr.bf16.mxu0 %v1287_v60  ;;  %v1173_v10 = vpop.trf.xlu0 }
 0x1b0   : > { %2324 = vmatpush3.bf16.msra.mxu1 %v1158_v57  ;;  %v915_v57 = vmul.f32 %v3169_v25, %v901_v49  ;;  %v2526_v49 = vld [vmem:[%s3388_s7 + $0x60] ss:$8 sps:$4 sm:$0xff] (!%p2123_p12)  }
 0x1b1   : > { %2325 = vmatprep.subr.bf16.mxu1 %v1159_v61 }
 0x1b2   : > { %2348 = vmatpush3.bf16.msra.mxu0 %v1287_v60  ;;  %v941_v60 = vmul.f32 %v933_v52, %v3169_v25  ;;  %v2527_v52 = vld [vmem:[%s3388_s7 + $0x74] ss:$8 sps:$4 sm:$0xff] (!%p2123_p12)  }
 0x1b3   : > { %2349 = vmatprep.subr.bf16.mxu0 %v1288_v1 }
 0x1b4   : > { %2326 = vmatpush3.bf16.msra.mxu1 %v1159_v61  ;;  %v932_v61 = vld [vmem:[#allocation3 + $0x28] sm:$0xff] }
 0x1b5   : > { %2327 = vmatprep.subr.bf16.mxu1 %v1160_v63 }
 0x1b6   : > { %2350 = vmatpush3.bf16.msra.mxu0 %v1288_v1 }
 0x1b7   : > { %2351 = vmatprep.subr.bf16.mxu0 %v1289_v2 }
 0x1b8   : > { %2328 = vmatpush3.bf16.msra.mxu1 %v1160_v63 }
 0x1b9   : > { %2329 = vmatprep.subr.bf16.mxu1 %v1161_v3 }
 0x1ba   : > { %2352 = vmatpush3.bf16.msra.mxu0 %v1289_v2 }
 0x1bb   : > { %2353 = vmatprep.subr.bf16.mxu0 %v1290_v4 }
 0x1bc   : > { %2330 = vmatpush3.bf16.msra.mxu1 %v1161_v3 }
 0x1bd   : > { %2257 = vmatprep.subr.bf16.mxu1 (!%p2123_p12), %v2530_v47 }
 0x1be   : > { %2354 = vmatpush3.bf16.msra.mxu0 %v1290_v4 }
 0x1bf   : > { %2332 = vmatmul.mubr.bf16.vlgmr.msra.gmra.mrb[0].mxu1 %v1171_v50  ;;  %1552 = vmatprep.subr.bf16.mxu0 (!%p2123_p12), %v2506_v11  ;;  %v2205_v11 = vunpack.c.h.bf16 (!%p2123_p12), %v2221_v24 }
 0x1c0   : > { %2335 = vmatprep.mubr.bf16.mxu1 %v1172_v6 }
 0x1c1   : > { %2356 = vmatmul.mubr.bf16.vlgmr.msra.gmra.mrb[16].mxu0 %v1171_v50 }
 0x1c2   : > { %2359 = vmatprep.mubr.bf16.mxu0 %v1172_v6 }
 0x1c7   : > { %2336 = vmatmul.mubr.bf16.gmra.mrb[4].mxu1 %v1173_v10 }
 0x1c9   : > { %2360 = vmatmul.mubr.bf16.gmra.mrb[20].mxu0 %v1173_v10  ;;  %v940_v10 = vmul.f32 %v932_v61, %v3169_v25  ;;  %v2508_v25 = vld [vmem:[%s3388_s7] ss:$8 sps:$4 sm:$0xff] (!%p2123_p12)  }
 0x1ca   : > { %1553 = vmatpush1.bf16.msra.mxu0 (!%p2123_p12), %v2508_v25 }
 0x1cb   : > { %1554 = vmatprep.subr.bf16.mxu0 (!%p2123_p12), %v2509_v16 }
 0x1ce   : > { %1555 = vmatpush1.bf16.msra.mxu0 (!%p2123_p12), %v2511_v18 }
 0x292   : > { %v2333_v21 = vpop.f32.mrb[0].mxu1 }
 0x293   : > { %v1245_v27 = vadd.f32 %v2333_v21, %v913_v14  ;;  %v1212_v28 = vpop.f32.mrb[1].mxu1  ;;  %v2732_v14 = vmov (!%p2123_p12), 0   ;;  %v2512_v21 = vld [vmem:[%s3388_s7 + $0x24] ss:$8 sps:$4 sm:$0xff] (!%p2123_p12)  }
 0x294   : > { %v1243_v33 = vadd.f32 %v1212_v28, %v911_v23  ;;  %v2334_v34 = vpop.f32.mrb[2].mxu1  ;;  %v2357_v35 = vpop.f32.mrb[16].mxu0  ;;  %1584 = vmatprep.mubr.bf16.mxu0 (!%p2123_p12), %v2732_v14  ;;  %v2514_v23 = vld [vmem:[%s3388_s7 + $0x20] ss:$8 sps:$4 sm:$0xff] (!%p2123_p12)   ;;  %1556 = vmatprep.subr.bf16.mxu0 (!%p2123_p12), %v2512_v21  ;;  %v2222_v21 = vld [vmem:[%s2977_s17 + $0x10] sm:$0xff] (!%p2123_p12)  }
 0x295   : > { %1253 = vst [vmem:[#allocation2 + $0x10] sm:$0xff] %v1245_v27  ;;  %v1246_v39 = vadd.f32 %v2334_v34, %v914_v29  ;;  %v1358_v40 = vadd.f32 %v2357_v35, %v937_v30  ;;  %v1215_v42 = vpop.f32.mrb[3].mxu1  ;;  %v1325_v20 = vpop.f32.mrb[17].mxu0  ;;  %1557 = vmatpush1.bf16.msra.mxu0 (!%p2123_p12), %v2514_v23  ;;  %v2517_v27 = vld [vmem:[%s3388_s7 + $0x30] ss:$8 sps:$4 sm:$0xff] (!%p2123_p12)   ;;  %v2539_v23 = vld [vmem:[#allocation8 + $0x20] sm:$0xff] (!%p2123_p12)  }
 0x296   : > { %1251 = vst [vmem:[#allocation2] sm:$0xff] %v1243_v33  ;;  %v1244_v12 = vadd.f32 %v1215_v42, %v912_v37  ;;  %v1356_v46 = vadd.f32 %v1325_v20, %v935_v38  ;;  %v2358_v22 = vpop.f32.mrb[18].mxu0  ;;  %1558 = vmatprep.subr.bf16.mxu0 (!%p2123_p12), %v2515_v26  ;;  %v2518_v30 = vld [vmem:[%s3388_s7 + $0x44] ss:$8 sps:$4 sm:$0xff] (!%p2123_p12)   ;;  %v2521_v20 = vld [vmem:[%s3388_s7 + $0x54] ss:$8 sps:$4 sm:$0xff] (!%p2123_p12)  }
 0x297   : > { %1254 = vst [vmem:[#allocation2 + $0x18] sm:$0xff] %v1246_v39  ;;  %1366 = vst [vmem:[#allocation3 + $0x10] sm:$0xff] %v1358_v40  ;;  %v1359_v8 = vadd.f32 %v2358_v22, %v938_v43  ;;  %v1328_v48 = vpop.f32.mrb[19].mxu0  ;;  %v2520_v39 = vld [vmem:[%s3388_s7 + $0x40] ss:$8 sps:$4 sm:$0xff] (!%p2123_p12)  }
 0x298   : > { %1252 = vst [vmem:[#allocation2 + $0x8] sm:$0xff] %v1244_v12  ;;  %1364 = vst [vmem:[#allocation3] sm:$0xff] %v1356_v46  ;;  %v1357_v51 = vadd.f32 %v1328_v48, %v936_v45  ;;  %v2523_v43 = vld [vmem:[%s3388_s7 + $0x50] ss:$8 sps:$4 sm:$0xff] (!%p2123_p12)   ;;  %v2524_v12 = vld [vmem:[%s3388_s7 + $0x64] ss:$8 sps:$4 sm:$0xff] (!%p2123_p12)  }
 0x299   : > { %1367 = vst [vmem:[#allocation3 + $0x18] sm:$0xff] %v1359_v8  ;;  %1559 = vmatpush1.bf16.msra.mxu0 (!%p2123_p12), %v2517_v27  ;;  %v2199_v46 = vld [vmem:[%s2977_s17] sm:$0xff] (!%p2123_p12)  }
 0x29a   : > { %1365 = vst [vmem:[#allocation3 + $0x8] sm:$0xff] %v1357_v51  ;;  %v2337_v56 = vpop.f32.mrb[4].mxu1  ;;  %1560 = vmatprep.subr.bf16.mxu0 (!%p2123_p12), %v2518_v30  ;;  %v2531_v48 = vld [vmem:[#allocation8] sm:$0xff] (!%p2123_p12)   ;;  %v2200_v13 = vunpack.c.l.bf16 (!%p2123_p12), %v2199_v46  ;;  %v2208_v30 = vunpack.c.l.bf16 (!%p2123_p12), %v2222_v21 }
 0x29b   : > { %v1249_v58 = vadd.f32 %v2337_v56, %v917_v53  ;;  %v1228_v9 = vpop.f32.mrb[5].mxu1  ;;  %2258 = vmatpush3.bf16.msra.mxu1 (!%p2123_p12), %v2531_v48  ;;  %v2533_v53 = vld [vmem:[#allocation8 + $0x8] sm:$0xff] (!%p2123_p12)  }
 0x29c   : > { %v1247_v19 = vadd.f32 %v1228_v9, %v915_v57  ;;  %v2338_v62 = vpop.f32.mrb[6].mxu1  ;;  %v2361_v63 = vpop.f32.mrb[20].mxu0  ;;  %1375 = sbr.rel (%p2123_p12) target bundleno = 1165 (0x48d), region = 88  ;;  %v1386_v34 = vld [vmem:[#allocation2 + $0x10] sm:$0xff] (!%p2123_p12)  ;;  %2259 = vmatprep.subr.bf16.mxu1 (!%p2123_p12), %v2532_v17  ;;  %v2201_v57 = vunpack.c.h.bf16 (!%p2123_p12), %v2199_v46 }
 0x29d   : > { %1257 = vst [vmem:[#allocation2 + $0x30] sm:$0xff] %v1249_v58  ;;  %v1250_v1 = vadd.f32 %v2338_v62, %v918_v59  ;;  %v1362_v55 = vadd.f32 %v2361_v63, %v941_v60  ;;  %v1231_v2 = vpop.f32.mrb[7].mxu1  ;;  %v1341_v3 = vpop.f32.mrb[21].mxu0  ;;  %v1384_v28 = vld [vmem:[#allocation2] sm:$0xff] (!%p2123_p12)  ;;  %v1394_v37 = vmax.f32 (!%p2123_p12), %v1386_v34, 1e-12  ;;  %1561 = vmatpush1.bf16.msra.mxu0 (!%p2123_p12), %v2520_v39 }
 0x29e   : > { %1255 = vst [vmem:[#allocation2 + $0x20] sm:$0xff] %v1247_v19  ;;  %v1248_v4 = vadd.f32 %v1231_v2, %v916_v44  ;;  %v1360_v50 = vadd.f32 %v1341_v3, %v939_v0  ;;  %v2362_v6 = vpop.f32.mrb[22].mxu0  ;;  %v1392_v31 = vmax.f32 (!%p2123_p12), %v1384_v28, 1e-12  ;;  %v1387_v35 = vld [vmem:[#allocation2 + $0x18] sm:$0xff] (!%p2123_p12)  ;;  %1562 = vmatprep.subr.bf16.mxu0 (!%p2123_p12), %v2521_v20  ;;  %v1378_v61 = vld [vmem:[#allocation3 + $0x10] sm:$0xff] (!%p2123_p12) }
 0x29f   : > { %1258 = vst [vmem:[#allocation2 + $0x38] sm:$0xff] %v1250_v1  ;;  %1370 = vst [vmem:[#allocation3 + $0x30] sm:$0xff] %v1362_v55  ;;  %v1363_v15 = vadd.f32 %v2362_v6, %v942_v41  ;;  %v1344_v5 = vpop.f32.mrb[23].mxu0  ;;  %v1385_v29 = vld [vmem:[#allocation2 + $0x8] sm:$0xff] (!%p2123_p12)  ;;  %v1395_v38 = vmax.f32 (!%p2123_p12), %v1387_v35, 1e-12  ;;  %2260 = vmatpush3.bf16.msra.mxu1 (!%p2123_p12), %v2533_v53  ;;  %v2209_v35 = vunpack.c.h.bf16 (!%p2123_p12), %v2222_v21 }
 0x2a0   : > { %1256 = vst [vmem:[#allocation2 + $0x28] sm:$0xff] %v1248_v4  ;;  %1368 = vst [vmem:[#allocation3 + $0x20] sm:$0xff] %v1360_v50  ;;  %v1361_v7 = vadd.f32 %v1344_v5, %v940_v10  ;;  %v1393_v33 = vmax.f32 (!%p2123_p12), %v1385_v29, 1e-12  ;;  %2546 = vrcp.f32 (!%p2123_p12), %v1392_v31  ;;  %v1376_v8 = vld [vmem:[#allocation3] sm:$0xff] (!%p2123_p12)  ;;  %v1379_v19 = vld [vmem:[#allocation3 + $0x18] sm:$0xff] (!%p2123_p12)  ;;  %2261 = vmatprep.subr.bf16.mxu1 (!%p2123_p12), %v2534_v54  ;;  %v2204_v4 = vunpack.c.l.bf16 (!%p2123_p12), %v2221_v24 }
 0x2a1   : > { %1371 = vst [vmem:[#allocation3 + $0x38] sm:$0xff] %v1363_v15  ;;  %v1377_v51 = vld [vmem:[#allocation3 + $0x8] sm:$0xff] (!%p2123_p12)  ;;  %1563 = vmatpush1.bf16.msra.mxu0 (!%p2123_p12), %v2523_v43  ;;  %v2529_v59 = vld [vmem:[%s3388_s7 + $0x70] ss:$8 sps:$4 sm:$0xff] (!%p2123_p12)   ;;  %v1460_v54 = vld [vmem:[%s3389_s8] sm:$0x3] (!%p2123_p12) }
 0x2a2   : > { %1369 = vst [vmem:[#allocation3 + $0x28] sm:$0xff] %v1361_v7  ;;  %2548 = vrcp.f32 (!%p2123_p12), %v1393_v33  ;;  %1564 = vmatprep.subr.bf16.mxu0 (!%p2123_p12), %v2524_v12  ;;  %v2535_v0 = vld [vmem:[#allocation8 + $0x10] sm:$0xff] (!%p2123_p12)   ;;  %v2536_v2 = vld [vmem:[#allocation8 + $0x58] sm:$0xff] (!%p2123_p12)   ;;  %v2538_v10 = vld [vmem:[#allocation8 + $0x60] sm:$0xff] (!%p2123_p12)  }
 0x2a3   : > { %2550 = vrcp.f32 %v1394_v37  ;;  %v2537_v6 = vld [vmem:[#allocation8 + $0x18] sm:$0xff]   ;;  %2262 = vmatpush3.bf16.msra.mxu1 %v2535_v0  ;;  %v2540_v29 = vld [vmem:[#allocation8 + $0x68] sm:$0xff]   ;;  %v2542_v17 = vld [vmem:[#allocation8 + $0x70] sm:$0xff]  }
 0x2a4   : > { %2552 = vrcp.f32 %v1395_v38  ;;  %v1390_v58 = vld [vmem:[#allocation2 + $0x30] sm:$0xff]  ;;  %2263 = vmatprep.subr.bf16.mxu1 %v2536_v2  ;;  %v2544_v53 = vld [vmem:[#allocation8 + $0x78] sm:$0xff]  }
 0x2a5   : > { %v1388_v40 = vld [vmem:[#allocation2 + $0x20] sm:$0xff]  ;;  %1565 = vmatpush1.bf16.msra.mxu0 %v2526_v49  ;;  %v1398_v41 = vmax.f32 %v1390_v58, 1e-12 }
 0x2a6   : > { %v1396_v22 = vmax.f32 %v1388_v40, 1e-12  ;;  %v1391_v62 = vld [vmem:[#allocation2 + $0x38] sm:$0xff]  ;;  %1566 = vmatprep.subr.bf16.mxu0 %v2527_v52  ;;  %v1382_v20 = vld [vmem:[#allocation3 + $0x30] sm:$0xff] }
 0x2a7   : > { %v1389_v42 = vld [vmem:[#allocation2 + $0x28] sm:$0xff]  ;;  %v1399_v50 = vmax.f32 %v1391_v62, 1e-12  ;;  %2264 = vmatpush3.bf16.msra.mxu1 %v2537_v6  ;;  %v1380_v27 = vld [vmem:[#allocation3 + $0x20] sm:$0xff]  ;;  %v2543_v52 = vld [vmem:[#allocation8 + $0x30] sm:$0xff]  }
 0x2a8   : > { %v1397_v45 = vmax.f32 %v1389_v42, 1e-12  ;;  %2554 = vrcp.f32 %v1396_v22  ;;  %2265 = vmatprep.subr.bf16.mxu1 %v2538_v10  ;;  %v2223_v40 = vld [vmem:[%s2977_s17 + $0x18] sm:$0xff]  }
 0x2a9   : > { %1567 = vmatpush1.bf16.msra.mxu0 %v2529_v59  ;;  %v1381_v28 = vld [vmem:[#allocation3 + $0x28] sm:$0xff]  ;;  %v1383_v43 = vld [vmem:[#allocation3 + $0x38] sm:$0xff]  ;;  %v2212_v12 = vunpack.c.l.bf16 %v2223_v40  ;;  %v2213_v47 = vunpack.c.h.bf16 %v2223_v40 }
 0x2aa   : > { %v2547_v56 = vpop.eup %2546  ;;  %2556 = vrcp.f32 %v1397_v45 }
 0x2ab   : > { %v1408_v60 = vmul.f32 %v2547_v56, %v1376_v8  ;;  %2558 = vrcp.f32 %v1398_v41  ;;  %2266 = vmatpush3.bf16.msra.mxu1 %v2539_v23  ;;  %v1468_v56 = vsub.s32 1, %v3146_v32 }
 0x2ac   : > { %v2549_v9 = vpop.eup %2548  ;;  %2560 = vrcp.f32 %v1399_v50  ;;  %2267 = vmatprep.subr.bf16.mxu1 %v2540_v29 }
 0x2ad   : > { %v2551_v63 = vpop.eup %2550  ;;  %v1409_v44 = vmul.f32 %v2549_v9, %v1377_v51  ;;  %v1432_v55 = vadd.f32 %v2200_v13, %v1408_v60  ;;  %v2541_v51 = vld [vmem:[#allocation8 + $0x28] sm:$0xff]   ;;  %v2545_v13 = vld [vmem:[#allocation8 + $0x38] sm:$0xff]  }
 0x2ae   : > { %v2553_v1 = vpop.eup %2552  ;;  %v1410_v5 = vmul.f32 %v2551_v63, %v1378_v61 }
 0x2af   : > { %v1433_v3 = vadd.f32 %v2201_v57, %v1409_v44  ;;  %v1411_v7 = vmul.f32 %v2553_v1, %v1379_v19  ;;  %2268 = vmatpush3.bf16.msra.mxu1 %v2541_v51  ;;  %v1469_v57 = vrot.slane %v1460_v54, %v1468_v56 }
 0x2b0   : > { %v1434_v16 = vadd.f32 %v2204_v4, %v1410_v5  ;;  %2269 = vmatprep.subr.bf16.mxu1 %v2542_v17 }
 0x2b1   : > { %v1440_v15 = vpack.c.bf16 %v1433_v3, %v1432_v55  ;;  %v1435_v18 = vadd.f32 %v2205_v11, %v1411_v7 }
 0x2b2   : > { %v2555_v25 = vpop.eup %2554 }
 0x2b3   : > { %1585 = vmatmul.mubr.bf16.vlgmr.msra.gmra.mrb[0].mxu0 %v1440_v15  ;;  %v1441_v31 = vpack.c.bf16 %v1435_v18, %v1434_v16  ;;  %v1412_v33 = vmul.f32 %v2555_v25, %v1380_v27  ;;  %2270 = vmatpush3.bf16.msra.mxu1 %v2543_v52  ;;  %v3268_v52 = vld [vmem:[%s3440_s10] ss:$0 sm:$0xff] }
 0x2b4   : > { %v2557_v26 = vpop.eup %2556  ;;  %1594 = vmatprep.mubr.bf16.mxu0 %v2732_v14  ;;  %2271 = vmatprep.subr.bf16.mxu1 %v2544_v53 }
 0x2b5   : > { %v1413_v34 = vmul.f32 %v2557_v26, %v1381_v28  ;;  %v2559_v37 = vpop.eup %2558  ;;  %v1436_v38 = vadd.f32 %v2208_v30, %v1412_v33 }
 0x2b6   : > { %v2561_v42 = vpop.eup %2560  ;;  %v1414_v22 = vmul.f32 %v2559_v37, %v1382_v20 }
 0x2b7   : > { %v1437_v39 = vadd.f32 %v2209_v35, %v1413_v34  ;;  %v1415_v45 = vmul.f32 %v2561_v42, %v1383_v43  ;;  %2272 = vmatpush3.bf16.msra.mxu1 %v2545_v13 }
 0x2b8   : > { %v1438_v8 = vadd.f32 %v2212_v12, %v1414_v22 }
 0x2b9   : > { %v1442_v46 = vpack.c.bf16 %v1437_v39, %v1436_v38  ;;  %v1439_v48 = vadd.f32 %v2213_v47, %v1415_v45 }
 0x2bb   : > { %1595 = vmatmul.mubr.bf16.gmra.mrb[4].mxu0 %v1441_v31  ;;  %v1443_v49 = vpack.c.bf16 %v1439_v48, %v1438_v8 }
 0x2bc   : > { %1604 = vmatprep.mubr.bf16.mxu0 %v2732_v14 }
 0x2c3   : > { %1605 = vmatmul.mubr.bf16.gmra.mrb[8].mxu0 %v1442_v46 }
 0x2c4   : > { %1614 = vmatprep.mubr.bf16.mxu0 %v2732_v14  ;;  %v1465_v14 = vrot.slane %v1460_v54, %v3149_v36 }
 0x2cb   : > { %1615 = vmatmul.mubr.bf16.gmra.mrb[12].mxu0 %v1443_v49 }
 0x386   : > { %v1586_v24 = vpop.f32.mrb[0].mxu0 }
 0x387   : > { %v1587_v58 = vadd.f32 %v1586_v24, %v1465_v14  ;;  %v1588_v9 = vpop.f32.mrb[1].mxu0  ;;  %v3274_v24 = vld [vmem:[%s3441_s18] ss:$0 sm:$0xff] }
 0x388   : > { %v1589_v59 = vadd.f32 %v1588_v9, %v1469_v57  ;;  %v1590_v60 = vpop.f32.mrb[2].mxu0 }
 0x389   : > { %v1591_v61 = vadd.f32 %v1590_v60, %v1465_v14  ;;  %v1592_v19 = vpop.f32.mrb[3].mxu0  ;;  %v1625_v63 = vmax.f32 %v1587_v58, 0.0 }
 0x38a   : > { %v1593_v62 = vadd.f32 %v1592_v19, %v1469_v57  ;;  %v1626_v0 = vmax.f32 %v1589_v59, 0.0  ;;  %v3280_v59 = vld [vmem:[%s3442_s9] ss:$0 sm:$0xff] }
 0x38b   : > { %v1627_v44 = vmax.f32 %v1591_v61, 0.0 }
 0x38c   : > { %v1628_v1 = vmax.f32 %v1593_v62, 0.0  ;;  %v1887_v62 = vld [vmem:[%s2993_s20] sm:$0xff] }
 0x38d   : > { %v1641_v55 = vpack.c.bf16 %v1627_v44, %v1625_v63 }
 0x38e   : > { %v1596_v2 = vpop.f32.mrb[4].mxu0  ;;  %v1642_v3 = vpack.c.bf16 %v1628_v1, %v1626_v0 }
 0x38f   : > { %v1597_v41 = vadd.f32 %v1596_v2, %v1465_v14  ;;  %v1598_v32 = vpop.f32.mrb[5].mxu0  ;;  %v1888_v2 = vld [vmem:[%s2993_s20 + $0x8] sm:$0xff] }
 0x390   : > { %v1599_v4 = vadd.f32 %v1598_v32, %v1469_v57  ;;  %v1600_v36 = vpop.f32.mrb[6].mxu0  ;;  %1816 = vmatprep.mubr.bf16.mxu1 %v1642_v3 }
 0x391   : > { %v1601_v50 = vadd.f32 %v1600_v36, %v1465_v14  ;;  %v1602_v6 = vpop.f32.mrb[7].mxu0  ;;  %1817 = vmatmul.mubr.bf16.vlgmr.msra.gmra.mrb[0].mxu1 %v1641_v55  ;;  %v1629_v15 = vmax.f32 %v1597_v41, 0.0 }
 0x392   : > { %v1603_v10 = vadd.f32 %v1602_v6, %v1469_v57  ;;  %v1630_v7 = vmax.f32 %v1599_v4, 0.0 }
 0x393   : > { %v1631_v5 = vmax.f32 %v1601_v50, 0.0 }
 0x394   : > { %v1632_v11 = vmax.f32 %v1603_v10, 0.0 }
 0x395   : > { %v1643_v25 = vpack.c.bf16 %v1631_v5, %v1629_v15 }
 0x396   : > { %v1644_v16 = vpack.c.bf16 %v1632_v11, %v1630_v7  ;;  %v1606_v18 = vpop.f32.mrb[8].mxu0  ;;  %v1889_v11 = vld [vmem:[%s2993_s20 + $0x10] sm:$0xff] }
 0x397   : > { %v1607_v21 = vadd.f32 %v1606_v18, %v1465_v14  ;;  %v1608_v23 = vpop.f32.mrb[9].mxu0 }
 0x398   : > { %v1609_v26 = vadd.f32 %v1608_v23, %v1469_v57  ;;  %v1610_v27 = vpop.f32.mrb[10].mxu0  ;;  %1824 = vmatprep.mubr.bf16.mxu1 %v1644_v16 }
 0x399   : > { %v1611_v28 = vadd.f32 %v1610_v27, %v1465_v14  ;;  %v1612_v29 = vpop.f32.mrb[11].mxu0  ;;  %1825 = vmatmul.mubr.bf16.gmra.mrb[4].mxu1 %v1643_v25  ;;  %v1633_v31 = vmax.f32 %v1607_v21, 0.0 }
 0x39a   : > { %v1613_v30 = vadd.f32 %v1612_v29, %v1469_v57  ;;  %v1634_v34 = vmax.f32 %v1609_v26, 0.0  ;;  %v1890_v26 = vld [vmem:[%s2993_s20 + $0x18] sm:$0xff] }
 0x39b   : > { %v1635_v33 = vmax.f32 %v1611_v28, 0.0 }
 0x39c   : > { %v1636_v35 = vmax.f32 %v1613_v30, 0.0 }
 0x39d   : > { %v1645_v37 = vpack.c.bf16 %v1635_v33, %v1633_v31 }
 0x39e   : > { %v1646_v38 = vpack.c.bf16 %v1636_v35, %v1634_v34  ;;  %v1616_v39 = vpop.f32.mrb[12].mxu0 }
 0x39f   : > { %v1617_v40 = vadd.f32 %v1616_v39, %v1465_v14  ;;  %v1618_v42 = vpop.f32.mrb[13].mxu0 }
 0x3a0   : > { %v1619_v20 = vadd.f32 %v1618_v42, %v1469_v57  ;;  %v1620_v43 = vpop.f32.mrb[14].mxu0  ;;  %1832 = vmatprep.mubr.bf16.mxu1 %v1646_v38 }
 0x3a1   : > { %v1621_v12 = vadd.f32 %v1620_v43, %v1465_v14  ;;  %v1622_v46 = vpop.f32.mrb[15].mxu0  ;;  %1833 = vmatmul.mubr.bf16.gmra.mrb[8].mxu1 %v1645_v37  ;;  %v1637_v45 = vmax.f32 %v1617_v40, 0.0  ;;  %v1891_v40 = vld [vmem:[%s2993_s20 + $0x20] sm:$0xff] }
 0x3a2   : > { %v1623_v22 = vadd.f32 %v1622_v46, %v1469_v57  ;;  %v1638_v8 = vmax.f32 %v1619_v20, 0.0 }
 0x3a3   : > { %v1639_v47 = vmax.f32 %v1621_v12, 0.0 }
 0x3a4   : > { %v1640_v48 = vmax.f32 %v1623_v22, 0.0  ;;  %v1892_v22 = vld [vmem:[%s2993_s20 + $0x28] sm:$0xff] }
 0x3a5   : > { %v1647_v49 = vpack.c.bf16 %v1639_v47, %v1637_v45 }
 0x3a6   : > { %v1648_v51 = vpack.c.bf16 %v1640_v48, %v1638_v8 }
 0x3a8   : > { %1840 = vmatprep.mubr.bf16.mxu1 %v1648_v51 }
 0x3a9   : > { %1841 = vmatmul.mubr.bf16.gmra.mrb[12].mxu1 %v1647_v49 }
 0x464   : > { %v2273_v17 = vpop.f32.mrb[0].mxu1 }
 0x465   : > { %v2274_v53 = vpop.f32.mrb[1].mxu1 }
 0x466   : > { %v2275_v13 = vadd.f32 %v2274_v53, %v2273_v17  ;;  %v2276_v54 = vpop.f32.mrb[2].mxu1 }
 0x467   : > { %v2277_v56 = vpop.f32.mrb[3].mxu1 }
 0x468   : > { %v1819_v14 = vadd.f32 %v2275_v13, %v3268_v52  ;;  %v2278_v57 = vadd.f32 %v2277_v56, %v2276_v54  ;;  %v1893_v56 = vld [vmem:[%s2993_s20 + $0x30] sm:$0xff] }
 0x46a   : > { %v1849_v58 = vmax.f32 %v1819_v14, 0.0  ;;  %v1822_v9 = vadd.f32 %v2278_v57, %v3268_v52 }
 0x46c   : > { %v1864_v60 = vmul.f32 %v3274_v24, %v1849_v58  ;;  %v1850_v61 = vmax.f32 %v1822_v9, 0.0  ;;  %v2279_v19 = vpop.f32.mrb[4].mxu1  ;;  %v1894_v58 = vld [vmem:[%s2993_s20 + $0x38] sm:$0xff] }
 0x46d   : > { %v2280_v63 = vpop.f32.mrb[5].mxu1 }
 0x46e   : > { %v1879_v44 = vadd.f32 %v3280_v59, %v1864_v60  ;;  %v1865_v0 = vmul.f32 %v3274_v24, %v1850_v61  ;;  %v2281_v1 = vadd.f32 %v2280_v63, %v2279_v19  ;;  %v2282_v55 = vpop.f32.mrb[6].mxu1 }
 0x46f   : > { %v2283_v3 = vpop.f32.mrb[7].mxu1 }
 0x470   : > { %v1895_v41 = vadd.f32 %v1887_v62, %v1879_v44  ;;  %v1880_v32 = vadd.f32 %v3280_v59, %v1865_v0  ;;  %v1827_v4 = vadd.f32 %v2281_v1, %v3268_v52  ;;  %v2284_v36 = vadd.f32 %v2283_v3, %v2282_v55 }
 0x472   : > { %1903 = vst [vmem:[%s3010_s19] sm:$0xff] %v1895_v41  ;;  %v1896_v50 = vadd.f32 %v1888_v2, %v1880_v32  ;;  %v1851_v6 = vmax.f32 %v1827_v4, 0.0  ;;  %v1830_v10 = vadd.f32 %v2284_v36, %v3268_v52 }
 0x474   : > { %1904 = vst [vmem:[%s3010_s19 + $0x8] sm:$0xff] %v1896_v50  ;;  %v1866_v15 = vmul.f32 %v3274_v24, %v1851_v6  ;;  %v1852_v5 = vmax.f32 %v1830_v10, 0.0  ;;  %v2285_v7 = vpop.f32.mrb[8].mxu1 }
 0x475   : > { %v2286_v25 = vpop.f32.mrb[9].mxu1 }
 0x476   : > { %v1881_v16 = vadd.f32 %v3280_v59, %v1866_v15  ;;  %v1867_v18 = vmul.f32 %v3274_v24, %v1852_v5  ;;  %v2287_v21 = vadd.f32 %v2286_v25, %v2285_v7  ;;  %v2288_v23 = vpop.f32.mrb[10].mxu1 }
 0x477   : > { %v2289_v27 = vpop.f32.mrb[11].mxu1 }
 0x478   : > { %v1897_v28 = vadd.f32 %v1889_v11, %v1881_v16  ;;  %v1882_v29 = vadd.f32 %v3280_v59, %v1867_v18  ;;  %v1835_v30 = vadd.f32 %v2287_v21, %v3268_v52  ;;  %v2290_v31 = vadd.f32 %v2289_v27, %v2288_v23 }
 0x47a   : > { %1905 = vst [vmem:[%s3010_s19 + $0x10] sm:$0xff] %v1897_v28  ;;  %v1898_v33 = vadd.f32 %v1890_v26, %v1882_v29  ;;  %v1853_v34 = vmax.f32 %v1835_v30, 0.0  ;;  %v1838_v35 = vadd.f32 %v2290_v31, %v3268_v52 }
 0x47c   : > { %1906 = vst [vmem:[%s3010_s19 + $0x18] sm:$0xff] %v1898_v33  ;;  %v1868_v37 = vmul.f32 %v3274_v24, %v1853_v34  ;;  %v1854_v38 = vmax.f32 %v1838_v35, 0.0  ;;  %v2291_v39 = vpop.f32.mrb[12].mxu1 }
 0x47d   : > { %v2292_v42 = vpop.f32.mrb[13].mxu1 }
 0x47e   : > { %v1883_v20 = vadd.f32 %v3280_v59, %v1868_v37  ;;  %v1869_v43 = vmul.f32 %v3274_v24, %v1854_v38  ;;  %v2293_v12 = vadd.f32 %v2292_v42, %v2291_v39  ;;  %v2294_v46 = vpop.f32.mrb[14].mxu1 }
 0x47f   : > { %v2295_v45 = vpop.f32.mrb[15].mxu1 }
 0x480   : > { %v1899_v47 = vadd.f32 %v1891_v40, %v1883_v20  ;;  %v1884_v8 = vadd.f32 %v3280_v59, %v1869_v43  ;;  %v1843_v48 = vadd.f32 %v2293_v12, %v3268_v52  ;;  %v2296_v49 = vadd.f32 %v2295_v45, %v2294_v46 }
 0x482   : > { %1907 = vst [vmem:[%s3010_s19 + $0x20] sm:$0xff] %v1899_v47  ;;  %v1900_v51 = vadd.f32 %v1892_v22, %v1884_v8  ;;  %v1855_v17 = vmax.f32 %v1843_v48, 0.0  ;;  %v1846_v53 = vadd.f32 %v2296_v49, %v3268_v52 }
 0x484   : > { %1908 = vst [vmem:[%s3010_s19 + $0x28] sm:$0xff] %v1900_v51  ;;  %v1870_v13 = vmul.f32 %v3274_v24, %v1855_v17  ;;  %v1856_v54 = vmax.f32 %v1846_v53, 0.0 }
 0x486   : > { %v1885_v14 = vadd.f32 %v3280_v59, %v1870_v13  ;;  %v1871_v57 = vmul.f32 %v3274_v24, %v1856_v54 }
 0x488   : > { %v1901_v9 = vadd.f32 %v1893_v56, %v1885_v14  ;;  %v1886_v60 = vadd.f32 %v3280_v59, %v1871_v57 }
 0x48a   : > { %1909 = vst [vmem:[%s3010_s19 + $0x30] sm:$0xff] %v1901_v9  ;;  %v1902_v61 = vadd.f32 %v1894_v58, %v1886_v60 }
 0x48c   : > { %1910 = vst [vmem:[%s3010_s19 + $0x38] sm:$0xff] %v1902_v61 }
 0x48d PF: > { %s2165_s25 = sshll.u32 %s2710_s29, 10  ;;  %s3443_s14 = sld [smem:[#allocation28_spill]] }
 0x48e   : > { %s1925_s30 = sshll.u32 %s3010_s19, 4  ;;  %s1912_s20 = scalar_lea.sflag [#allocation7], %s2973_s13  ;;  %s3327_s30 = int_to_ptr.vmem [resolvable:$true] %s1925_s30 }
 0x48f   : > { %s2620_s22 = scalar_lea.vmem %s3327_s30, 1024  ;;  %s2733_s21 = smov [#allocation10]  }
 0x490   : > { %p2621_p13 = scmp.ne.s32.totalorder %s3327_s30, %s2620_s22  ;;  %s2624_s12 = sshll.u32 %s2733_s21, 4  ;;  %s2625_s12 = int_to_ptr.vmem [resolvable:$false] %s2624_s12 }
 0x491   : > { %s2626_s29 = scalar_lea.vmem %s2625_s12, 2048  ;;  %p2627_p1 = scmp.lt.s32.totalorder %s3327_s30, %s2625_s12 }
 0x492   : > { %p2622_p3 = pnand %p2621_p13, %p2912_p8  ;;  %p2628_p2 = scmp.lt.s32.totalorder %s2626_s29, %s2620_s22 }
 0x493   : > { %s3444_s17 = smov %s3443_s14  ;;  %s3324_s26 = scalar_lea.hbm %s3443_s14, %s2165_s25 }
 0x494   : > { %p2623_p7 = pneg %p2622_p3  ;;  %p2629_p4 = por %p2628_p2, %p2627_p1 }
 0x496   : > { %p2630_p5 = pnand %p2629_p4, %p2623_p7 }
 0x498   : > { %2633 = shalt.err (!%p2630_p5)
}
 0x499   : > { %s2634_s19 = scalar_lea.hbm %s3324_s26, 1024  ;;  %s2638_s23 = scalar_lea.hbm %s3444_s17, 2048 }
 0x49a   : > { %p2635_p9 = scmp.ne.s32.totalorder %s3324_s26, %s2634_s19  ;;  %p2639_p11 = scmp.lt.u32.totalorder %s3324_s26, %s3444_s17 }
 0x49b   : > { %p2640_p10 = scmp.lt.u32.totalorder %s2638_s23, %s2634_s19  ;;  %p2642_p13 = scmp.lt.u32.totalorder %s2634_s19, %s3324_s26 }
 0x49c   : > { %p2636_p0 = pnand %p2635_p9, %p2912_p8 }
 0x49d   : > { %p2641_p12 = por %p2640_p10, %p2639_p11 }
 0x49e   : > { %p2637_p6 = pneg %p2636_p0 }
 0x49f   : > { %p2643_p3 = por %p2642_p13, %p2641_p12 }
 0x4a1   : > { %p2644_p7 = pnand %p2643_p3, %p2637_p6 }
 0x4a3   : > { %2647 = shalt.err (!%p2644_p7)
}
 0x4a4   : > { %s2734_s24 = smov 128   ;;  %s2735_s9 = smov 8  }
 0x4a5   : > { %2369 = dma.vmem_to_hbm [thread:$0]  (%p2912_p8), %s3327_s30, 1024, %s3324_s26, %s1912_s20, %s2734_s24, %s2734_s24, %s2735_s9  }
 0x4a6 PF: > { %s3445_s25 = sld [smem:[#allocation14_spill]]  ;;  %s3446_s1 = sld [smem:[#allocation19_spill]] }
 0x4a7   : > { %p2386_p1 = scmp.ge.s32.totalorder %s2722_s15, 2 }
 0x4ac   : > { %s1940_s27 = sand.u32 1, %s3445_s25   ;;  %p3447_p2 = scmp.ne.s32.totalorder %s3446_s1, 0 }
 0x4ad   : > { %s1941_s14 = scalar_lea.sflag [#allocation7], %s1940_s27 }
 0x4ae   : > { %p2380_p4 = pnand %p2386_p1, %p3447_p2 }
 0x4b0   : > { %2689 = dma.done.wait (!%p2380_p4), %s1941_s14, 1024  }
 0x4b1   : > { %2691 = vsyncadd (!%p2380_p4), %s1941_s14, 4294966272  ;;  %s30_s15 = sadd.s32 1, %s2722_s15   ;;  %s3448_s25 = sld [smem:[#allocation15_spill]] }
 0x4b2   : > { %p27_p5 = scmp.ge.s32.totalorder %s30_s15, 6   ;;  %s3449_s26 = sld [smem:[#allocation16_spill]] }
 0x4b3   : > { %s3450_s27 = sld [smem:[#allocation22_spill]]  ;;  %s3451_s28 = sld [smem:[#allocation17_spill]] }
 0x4b4   : > { %s3452_s29 = sld [smem:[#allocation18_spill]]  ;;  %s3453_s30 = sld [smem:[#allocation20_spill]] }
 0x4b5   : > { %s3454_s14 = sld [smem:[#allocation21_spill]]  ;;  %29 = sbr.rel (!%p27_p5) target bundleno = 15 (0xf), region = 141 }
 0x4bc   :  { %1946 = vsyncpa [#allocation6], 1 }
 0x4bd   :  { %1948 = vsyncpa [#allocation6 + $0x1], 1 }
 0x4be   :  { %1949 = vsyncpa [#allocation9], 1 }
 0x4bf   :  { %1950 = vsyncpa [#allocation7], 1 }
 0x4c0   :  { %1952 = vsyncpa [#allocation7 + $0x1], 1 }

</bundles_post_ra>
